<compile_context>
chip_gen: v5e
topology: v5e:2x2
jax: 0.10.0
libtpu: 0.0.40
codegen_flags: <defaults>
</compile_context>

<pallas_src>
import functools

import numpy as np
import jax
import jax.numpy as jnp
from jax.experimental import pallas as pl
from jax.experimental.pallas import tpu as pltpu


# --------------------------- spatial operator matrices ---------------------------

def _adaptive_pool_matrix(out_size: int, in_size: int) -> np.ndarray:
    """Row-stochastic matrix reproducing torch.nn.AdaptiveAvgPool1d windows."""
    P = np.zeros((out_size, in_size), np.float32)
    for i in range(out_size):
        start = (i * in_size) // out_size
        end = -((-(i + 1) * in_size) // out_size)  # ceil((i+1)*in/out)
        P[i, start:end] = 1.0 / (end - start)
    return P


def _bilinear_matrix(out_size: int, in_size: int) -> np.ndarray:
    """1-D bilinear interpolation matrix, PyTorch align_corners=False semantics."""
    U = np.zeros((out_size, in_size), np.float32)
    scale = in_size / out_size
    for o in range(out_size):
        src = max((o + 0.5) * scale - 0.5, 0.0)
        i0 = min(int(np.floor(src)), in_size - 1)
        lam = src - i0
        i1 = min(i0 + 1, in_size - 1)
        U[o, i0] += 1.0 - lam
        U[o, i1] += lam
    return U


def _round_up(x: int, m: int) -> int:
    return -(-x // m) * m


# --------------------------------- Pallas kernel ---------------------------------

def _ppm_kernel(num_branches, offsets, sizes_padded,
                x_ref,       # (1, C_in, tile_hw)    f32  (cast to bf16 in-kernel)
                Mt_ref,      # (tile_hw, K)          bf16 stacked pooling operators^T
                Ut_ref,      # (K, tile_hw)          bf16 stacked bilinear operators^T
                Wc_ref,      # (B, PC_pad, C_in)     bf16 branch 1x1 conv^T (BN folded)
                bsh_ref,     # (B, PC_pad, 1)        f32  branch BN shift
                Wbx_ref,     # (OC_pad, C_in)        bf16 bottleneck slice for x^T
                Wbp_ref,     # (B, OC_pad, PC_pad)   bf16 bottleneck slices per branch^T
                osh_ref,     # (OC_pad, 1)           f32  bottleneck BN shift
                o_ref,       # (1, OC_pad, tile_hw)  bf16
                pooled_acc,  # VMEM (C_in, K)        f32  global-pool accumulator
                y_acc):      # VMEM (OC_pad, K)      bf16 per-batch pyramid code Y
    phase = pl.program_id(1)
    t = pl.program_id(2)
    last_t = pl.num_programs(2) - 1

    xb = x_ref[0].astype(jnp.bfloat16)  # (C_in, tile_hw)

    # -------- phase 0: accumulate adaptive average pooling over the HW tiles --------
    @pl.when(phase == 0)
    def _phase0():
        part = jnp.dot(xb, Mt_ref[...], preferred_element_type=jnp.float32)  # (C_in, K)

        @pl.when(t == 0)
        def _():
            pooled_acc[...] = part

        @pl.when(t != 0)
        def _():
            pooled_acc[...] = pooled_acc[...] + part

        # At the last HW tile: branch 1x1 conv + BN + ReLU, then fold each branch's
        # bottleneck slice:  Y_b = Wbp_b @ relu(Wc_b @ pooled + bsh_b).
        # Per-branch columns are selected with lane-iota masks (no lane-sliced stores);
        # the extra full-K FLOPs run once per batch and are negligible.
        @pl.when(t == last_t)
        def _():
            pooled_bf = pooled_acc[...].astype(jnp.bfloat16)                 # (C_in, K)
            K = pooled_bf.shape[1]
            lane = jax.lax.broadcasted_iota(jnp.int32, (1, K), 1)
            y = jnp.zeros((y_acc.shape[0], K), jnp.float32)
            for b in range(num_branches):
                z = jnp.dot(Wc_ref[b], pooled_bf,
                            preferred_element_type=jnp.float32)              # (PC_pad, K)
                z = jnp.maximum(z + bsh_ref[b], 0.0).astype(jnp.bfloat16)
                yb = jnp.dot(Wbp_ref[b], z,
                             preferred_element_type=jnp.float32)             # (OC_pad, K)
                sel = (lane >= offsets[b]) & (lane < offsets[b] + sizes_padded[b])
                y = y + jnp.where(sel, yb, 0.0)
            y_acc[...] = y.astype(y_acc.dtype)

    # -------- phase 1: bilinear upsample + concat + bottleneck, one HW tile each -----
    #   out_tile = relu( Wbx @ x_tile + Y @ Ut_tile + osh )
    # NOTE: Ut's zero rows for padded pooled entries mask the relu(bsh) contribution
    #       of the padded columns of Y — they must stay exactly zero.
    @pl.when(phase == 1)
    def _phase1():
        acc = jnp.dot(Wbx_ref[...], xb, preferred_element_type=jnp.float32)  # (OC_pad, t)
        acc = acc + jnp.dot(y_acc[...], Ut_ref[...],
                            preferred_element_type=jnp.float32)
        o_ref[0] = jnp.maximum(acc + osh_ref[...], 0.0).astype(o_ref.dtype)


# ----------------------------------- wrapper --------------------------------------

def _device_defaults():
    """Per-generation VMEM limit / tile size / pipelining depth."""
    try:
        cap = int(pltpu.get_tpu_info().vmem_capacity_bytes)
    except Exception:  # pragma: no cover — conservative v6e-like defaults
        cap = 128 * 1024 * 1024
    small_vmem = cap <= 96 * 1024 * 1024           # v7x: 64 MiB per TensorCore
    vmem_limit = min(64 * 1024 * 1024, (cap * 3) // 4)
    max_tile = 1024 if small_vmem else 2048
    deep_input_buffering = not small_vmem          # Buffered(3) only on 128-MiB parts
    return vmem_limit, max_tile, deep_input_buffering


def _choose_tiling(HW: int, max_tile: int):
    """Return (tile_hw, HW_padded).

    tile_hw is a multiple of 128 (lane dim of the x / output / operator tiles) unless
    it equals the full HW.  For HW > max_tile we pad HW up to a multiple of the tile,
    minimizing the padding while keeping tiles large (>=512) to amortize the
    ~0.35us/step pipeline overhead.
    """
    if HW <= max_tile:
        return HW, HW
    lo = 512 if max_tile >= 512 else 128
    best_t, best_hwp = None, None
    for t in range(lo, max_tile + 1, 128):
        hwp = _round_up(HW, t)
        if best_hwp is None or hwp < best_hwp or (hwp == best_hwp and t > best_t):
            best_t, best_hwp = t, hwp
    return best_t, best_hwp


def pyramid_pooling_forward(x_nchw, params, *, tile_hw=None):
    """x_nchw: (N, C_in, H, W) float32  ->  (N, out_channels, H, W) bfloat16 (NCHW)."""
    N, C_in, H, W = x_nchw.shape
    HW = H * W

    Mt, Ut = params["Mt"], params["Ut"]
    Wc, bsh = params["Wc"], params["bsh"]
    Wbx, Wbp, osh = params["Wbx"], params["Wbp"], params["osh"]
    offsets, sizes_padded = params["offsets"], params["sizes_padded"]
    out_ch = params["out_channels"]

    K = Mt.shape[1]
    B = Wc.shape[0]
    OC_pad = Wbx.shape[0]

    vmem_limit, max_tile, deep_buf = _device_defaults()

    if tile_hw is None:
        tile_hw, HWp = _choose_tiling(HW, max_tile)
    else:
        HWp = HW if tile_hw == HW else _round_up(HW, tile_hw)
        assert tile_hw == HWp or tile_hw % 128 == 0, (HW, tile_hw)
    T = HWp // tile_hw

    # NCHW is already channel-major: reshape is free, no transposes, no wrapper cast.
    x_flat = x_nchw.reshape(N, C_in, HW)
    if HWp != HW:
        x_flat = jnp.pad(x_flat, ((0, 0), (0, 0), (0, HWp - HW)))
        Mt = jnp.pad(Mt, ((0, HWp - HW), (0, 0)))   # zero pad rows: pooling unaffected
        Ut = jnp.pad(Ut, ((0, 0), (0, HWp - HW)))   # pad output pixels sliced off below

    kernel = functools.partial(_ppm_kernel, B, offsets, sizes_padded)

    def run(fancy_buffering: bool):
        def inv_spec(arr):
            # Grid-invariant operand (constant index map): single-buffer it so the
            # pipeline does not allocate a useless second VMEM copy.
            nd = arr.ndim
            if fancy_buffering:
                return pl.BlockSpec(arr.shape, lambda n, p, t: (0,) * nd,
                                    pipeline_mode=pl.Buffered(1))
            return pl.BlockSpec(arr.shape, lambda n, p, t: (0,) * nd)

        x_kwargs = {}
        if fancy_buffering and deep_buf:
            # Deeper input pipelining on v5e/v6e (128 MiB VMEM); skip on VMEM-tight v7x.
            x_kwargs["pipeline_mode"] = pl.Buffered(3)

        in_specs = [
            # x tile: re-read in both phases (f32 from HBM, cast in-kernel)
            pl.BlockSpec((1, C_in, tile_hw), lambda n, p, t: (n, 0, t), **x_kwargs),
            # pooling operator tile: varies with t in phase 0, parked at 0 in phase 1
            pl.BlockSpec((tile_hw, K), lambda n, p, t: ((1 - p) * t, 0)),
            # upsampling operator tile: parked at 0 in phase 0, varies with t in phase 1
            pl.BlockSpec((K, tile_hw), lambda n, p, t: (0, p * t)),
            inv_spec(Wc), inv_spec(bsh), inv_spec(Wbx), inv_spec(Wbp), inv_spec(osh),
        ]
        # Output blocks are only written in phase 1; keep the block index parked at
        # tile 0 during phase 0 so no garbage tiles are ever flushed to HBM and every
        # output block is visited in consecutive grid steps.
        out_spec = pl.BlockSpec((1, OC_pad, tile_hw), lambda n, p, t: (n, 0, p * t))

        return pl.pallas_call(
            kernel,
            out_shape=jax.ShapeDtypeStruct((N, OC_pad, HWp), jnp.bfloat16),
            grid=(N, 2, T),
            in_specs=in_specs,
            out_specs=out_spec,
            scratch_shapes=[
                pltpu.VMEM((C_in, K), jnp.float32),    # global-pool accumulator
                pltpu.VMEM((OC_pad, K), jnp.bfloat16),  # per-batch pyramid code Y
            ],
            compiler_params=pltpu.CompilerParams(
                dimension_semantics=("parallel", "arbitrary", "arbitrary"),
                vmem_limit_bytes=vmem_limit,
            ),
        )(x_flat, Mt, Ut, Wc, bsh, Wbx, Wbp, osh)

    try:
        out_flat = run(True)
    except Exception as e:
        # Only swallow pipeline_mode / Buffered lowering problems; genuine VMEM OOM or
        # other lowering failures must surface.
        msg = str(e).lower()
        if ("buffer" not in msg) and ("pipeline" not in msg):
            raise
        out_flat = run(False)

    out = out_flat[:, :out_ch, :HW]
    return out.reshape(N, out_ch, H, W)


# ------------------------------ deterministic params -------------------------------

def init_params(key, in_channels, out_channels, pooling_sizes, H, W,
                pool_channels=None, eps=1e-5):
    """Builds kernel-ready (folded / transposed / padded / bf16) params + f32 reference."""
    B = len(pooling_sizes)
    if pool_channels is None:
        pool_channels = in_channels // B
    PC = pool_channels
    HW = H * W

    # ----- stacked spatial operators (CHW orientation) -----
    # Per-branch pooled-pixel counts padded to x8; total K padded to a multiple of 128
    # (lane dim) by growing the last branch, so every column of Y is written.
    sizes = [s * s for s in pooling_sizes]
    sizes_padded = [_round_up(s2, 8) for s2 in sizes]
    K = _round_up(sum(sizes_padded), 128)
    sizes_padded[-1] += K - sum(sizes_padded)
    offsets = [0]
    for sp in sizes_padded[:-1]:
        offsets.append(offsets[-1] + sp)

    Mt_stacked = np.zeros((HW, K), np.float32)   # pooling operators, transposed
    Ut_stacked = np.zeros((K, HW), np.float32)   # bilinear operators, transposed
    M_list, U_list = [], []
    for b, s in enumerate(pooling_sizes):
        M = np.kron(_adaptive_pool_matrix(s, H), _adaptive_pool_matrix(s, W))  # (s*s, HW)
        Ub = np.kron(_bilinear_matrix(H, s), _bilinear_matrix(W, s))           # (HW, s*s)
        M_list.append(jnp.asarray(M))
        U_list.append(jnp.asarray(Ub))
        Mt_stacked[:, offsets[b]:offsets[b] + sizes[b]] = M.T
        Ut_stacked[offsets[b]:offsets[b] + sizes[b], :] = Ub.T
        # columns/rows beyond s*s stay exactly zero (mask the relu(bsh) leak of the
        # padded pooled entries in the phase-1 Y @ Ut matmul)

    # ----- random module parameters (conv weights + eval-mode BN) -----
    keys = jax.random.split(key, 2 * B + 2)

    def fold_bn(k, ch):
        kg, kb, km, kv = jax.random.split(k, 4)
        gamma = jax.random.uniform(kg, (ch,), jnp.float32, 0.5, 1.5)
        beta = 0.1 * jax.random.normal(kb, (ch,), jnp.float32)
        rmean = 0.1 * jax.random.normal(km, (ch,), jnp.float32)
        rvar = jax.random.uniform(kv, (ch,), jnp.float32, 0.5, 1.5)
        scale = gamma / jnp.sqrt(rvar + eps)
        shift = beta - rmean * scale
        return scale, shift

    Wc_list, bsc_list, bsh_list = [], [], []
    for b in range(B):
        w = jax.random.normal(keys[2 * b], (in_channels, PC), jnp.float32)
        w = w * np.sqrt(2.0 / in_channels)
        sc, sh = fold_bn(keys[2 * b + 1], PC)
        Wc_list.append(w)
        bsc_list.append(sc)
        bsh_list.append(sh)

    c_total = in_channels + PC * B
    W_bot = jax.random.normal(keys[2 * B], (c_total, out_channels), jnp.float32)
    W_bot = W_bot * np.sqrt(2.0 / c_total)
    osc, osh = fold_bn(keys[2 * B + 1], out_channels)

    # ----- fold BN scales into weights, transpose to CHW, pad channels to x8 -----
    PC_pad = _round_up(PC, 8)
    OC_pad = _round_up(out_channels, 8)

    Wc_k = np.zeros((B, PC_pad, in_channels), np.float32)
    bsh_k = np.zeros((B, PC_pad, 1), np.float32)
    Wbp_k = np.zeros((B, OC_pad, PC_pad), np.float32)
    for b in range(B):
        Wc_k[b, :PC, :] = np.asarray(Wc_list[b] * bsc_list[b][None, :]).T
        bsh_k[b, :PC, 0] = np.asarray(bsh_list[b])
        wbp = W_bot[in_channels + b * PC: in_channels + (b + 1) * PC]  # (PC, OC)
        Wbp_k[b, :out_channels, :PC] = np.asarray(wbp * osc[None, :]).T
    Wbx_k = np.zeros((OC_pad, in_channels), np.float32)
    Wbx_k[:out_channels, :] = np.asarray(W_bot[:in_channels] * osc[None, :]).T
    osh_k = np.zeros((OC_pad, 1), np.float32)
    osh_k[:out_channels, 0] = np.asarray(osh)

    params = dict(
        Mt=jnp.asarray(Mt_stacked, jnp.bfloat16),
        Ut=jnp.asarray(Ut_stacked, jnp.bfloat16),
        Wc=jnp.asarray(Wc_k, jnp.bfloat16),
        bsh=jnp.asarray(bsh_k, jnp.float32),
        Wbx=jnp.asarray(Wbx_k, jnp.bfloat16),
        Wbp=jnp.asarray(Wbp_k, jnp.bfloat16),
        osh=jnp.asarray(osh_k, jnp.float32),
        offsets=tuple(int(o) for o in offsets),
        sizes_padded=tuple(int(s) for s in sizes_padded),
        out_channels=int(out_channels),
    )
    ref = dict(M_list=M_list, U_list=U_list, Wc_list=Wc_list, bsc=bsc_list,
               bsh=bsh_list, W_bot=W_bot, osc=osc, osh=osh)
    return params, ref


# ------------------------------- pure-JAX reference --------------------------------

def reference_forward(x_nchw, ref):
    """f32 reference with identical (eval-mode BN, 1x1 bottleneck) semantics."""
    N, C_in, H, W = x_nchw.shape
    x_flat = jnp.transpose(x_nchw, (0, 2, 3, 1)).reshape(N, H * W, C_in)
    feats = [x_flat]
    for b in range(len(ref["M_list"])):
        pooled = jnp.einsum("kp,npc->nkc", ref["M_list"][b], x_flat)
        z = jnp.einsum("nkc,cd->nkd", pooled, ref["Wc_list"][b])
        z = jnp.maximum(z * ref["bsc"][b] + ref["bsh"][b], 0.0)
        up = jnp.einsum("pk,nkd->npd", ref["U_list"][b], z)
        feats.append(up)
    cat = jnp.concatenate(feats, axis=-1)
    out = jnp.einsum("npc,cd->npd", cat, ref["W_bot"])
    out = jnp.maximum(out * ref["osc"] + ref["osh"], 0.0)
    OC = ref["W_bot"].shape[1]
    return jnp.transpose(out.reshape(N, H, W, OC), (0, 3, 1, 2))


# -------------------------------------- main ---------------------------------------

if __name__ == "__main__":
    N, C_in, H, W = 2, 32, 16, 16
    pooling_sizes = (1, 2, 3, 6)
    out_channels = 64

    key = jax.random.PRNGKey(0)
    kx, kp = jax.random.split(key)
    x = jax.random.normal(kx, (N, C_in, H, W), jnp.float32)

    params, ref = init_params(kp, C_in, out_channels, pooling_sizes, H, W)

    # Exercise both the multi-tile (T=2) and the single-tile (T=1) code paths.
    y_tiled = jax.block_until_ready(pyramid_pooling_forward(x, params, tile_hw=128))
    y_full = jax.block_until_ready(pyramid_pooling_forward(x, params))
    assert y_tiled.shape == (N, out_channels, H, W), y_tiled.shape
    assert y_full.shape == (N, out_channels, H, W), y_full.shape

    y_ref = jax.block_until_ready(reference_forward(x, ref))
    yt = np.asarray(jnp.asarray(y_tiled, jnp.float32))
    yf = np.asarray(jnp.asarray(y_full, jnp.float32))
    yr = np.asarray(y_ref)
    # bf16 MXU operands / bf16 output with f32 accumulation -> loose tolerance vs f32.
    np.testing.assert_allclose(yt, yr, rtol=5e-2, atol=5e-2)
    np.testing.assert_allclose(yf, yr, rtol=5e-2, atol=5e-2)

    print("KERNEL_OK")
</pallas_src>

<mosaic_0001>
module attributes {stable_mosaic.version = 11 : i64} {
  func.func @_ppm_kernel(%arg0: i32, %arg1: i32, %arg2: i32, %arg3: memref<1x32x128xf32, #tpu.memory_space<vmem>>, %arg4: memref<128x128xbf16, #tpu.memory_space<vmem>>, %arg5: memref<128x128xbf16, #tpu.memory_space<vmem>>, %arg6: memref<4x8x32xbf16, #tpu.memory_space<vmem>>, %arg7: memref<4x8x1xf32, #tpu.memory_space<vmem>>, %arg8: memref<64x32xbf16, #tpu.memory_space<vmem>>, %arg9: memref<4x64x8xbf16, #tpu.memory_space<vmem>>, %arg10: memref<64x1xf32, #tpu.memory_space<vmem>>, %arg11: memref<1x64x128xbf16, #tpu.memory_space<vmem>>, %arg12: memref<32x128xf32, #tpu.memory_space<vmem>>, %arg13: memref<64x128xbf16, #tpu.memory_space<vmem>>) attributes {dimension_semantics = [#tpu.dimension_semantics<parallel>, #tpu.dimension_semantics<arbitrary>, #tpu.dimension_semantics<arbitrary>], iteration_bounds = array<i64: 2, 2, 2>, scalar_prefetch = 0 : i64, scratch_operands = 2 : i64, tpu.core_type = #tpu.core_type<tc>, window_params = [{transform_indices = @transform_0, window_bounds = array<i64: 1, 32, 128>}, {transform_indices = @transform_1, window_bounds = array<i64: 128, 128>}, {transform_indices = @transform_2, window_bounds = array<i64: 128, 128>}, {pipeline_mode = #tpu.pipeline_mode<synchronous>, transform_indices = @transform_3, window_bounds = array<i64: 4, 8, 32>}, {pipeline_mode = #tpu.pipeline_mode<synchronous>, transform_indices = @transform_4, window_bounds = array<i64: 4, 8, 1>}, {pipeline_mode = #tpu.pipeline_mode<synchronous>, transform_indices = @transform_5, window_bounds = array<i64: 64, 32>}, {pipeline_mode = #tpu.pipeline_mode<synchronous>, transform_indices = @transform_6, window_bounds = array<i64: 4, 64, 8>}, {pipeline_mode = #tpu.pipeline_mode<synchronous>, transform_indices = @transform_7, window_bounds = array<i64: 64, 1>}, {transform_indices = @transform_8, window_bounds = array<i64: 1, 64, 128>}]} {
    %c0 = arith.constant 0 : index
    %c0_0 = arith.constant 0 : index
    %c0_1 = arith.constant 0 : index
    %0 = vector.load %arg3[%c0, %c0_0, %c0_1] : memref<1x32x128xf32, #tpu.memory_space<vmem>>, vector<1x32x128xf32>
    %1 = vector.shape_cast %0 : vector<1x32x128xf32> to vector<32x128xf32>
    %2 = arith.truncf %1 : vector<32x128xf32> to vector<32x128xbf16>
    %c0_i32 = arith.constant 0 : i32
    %3 = arith.cmpi eq, %arg1, %c0_i32 : i32
    %4 = arith.extui %3 : i1 to i32
    %c0_i32_2 = arith.constant 0 : i32
    %5 = arith.cmpi ne, %4, %c0_i32_2 : i32
    scf.if %5 {
      %c0_4 = arith.constant 0 : index
      %c0_5 = arith.constant 0 : index
      %9 = vector.load %arg4[%c0_4, %c0_5] : memref<128x128xbf16, #tpu.memory_space<vmem>>, vector<128x128xbf16>
      %cst = arith.constant dense<0.000000e+00> : vector<32x128xf32>
      %10 = tpu.matmul %2, %9, %cst {dimension_numbers = #tpu.dot_dimension_numbers<[1], [0], [0], [1], [0, 0, 1, 1], [], []>} : vector<32x128xbf16>, vector<128x128xbf16>, vector<32x128xf32> -> vector<32x128xf32>
      %c0_i32_6 = arith.constant 0 : i32
      %11 = arith.cmpi eq, %arg2, %c0_i32_6 : i32
      %12 = arith.extui %11 : i1 to i32
      %c0_i32_7 = arith.constant 0 : i32
      %13 = arith.cmpi ne, %12, %c0_i32_7 : i32
      scf.if %13 {
        %c0_12 = arith.constant 0 : index
        %c0_13 = arith.constant 0 : index
        %20 = vector.load %arg12[%c0_12, %c0_13] : memref<32x128xf32, #tpu.memory_space<vmem>>, vector<32x128xf32>
        tpu.vector_store %arg12[%c0_12, %c0_13], %10 {strides = array<i32>} : memref<32x128xf32, #tpu.memory_space<vmem>>, vector<32x128xf32>,
      } else {
      }
      %c0_i32_8 = arith.constant 0 : i32
      %14 = arith.cmpi ne, %arg2, %c0_i32_8 : i32
      %15 = arith.extui %14 : i1 to i32
      %c0_i32_9 = arith.constant 0 : i32
      %16 = arith.cmpi ne, %15, %c0_i32_9 : i32
      scf.if %16 {
        %c0_12 = arith.constant 0 : index
        %c0_13 = arith.constant 0 : index
        %20 = vector.load %arg12[%c0_12, %c0_13] : memref<32x128xf32, #tpu.memory_space<vmem>>, vector<32x128xf32>
        %21 = arith.addf %20, %10 : vector<32x128xf32>
        %c0_14 = arith.constant 0 : index
        %c0_15 = arith.constant 0 : index
        %22 = vector.load %arg12[%c0_14, %c0_15] : memref<32x128xf32, #tpu.memory_space<vmem>>, vector<32x128xf32>
        tpu.vector_store %arg12[%c0_14, %c0_15], %21 {strides = array<i32>} : memref<32x128xf32, #tpu.memory_space<vmem>>, vector<32x128xf32>,
      } else {
      }
      %c1_i32_10 = arith.constant 1 : i32
      %17 = arith.cmpi eq, %arg2, %c1_i32_10 : i32
      %18 = arith.extui %17 : i1 to i32
      %c0_i32_11 = arith.constant 0 : i32
      %19 = arith.cmpi ne, %18, %c0_i32_11 : i32
      scf.if %19 {
        %c0_12 = arith.constant 0 : index
        %c0_13 = arith.constant 0 : index
        %20 = vector.load %arg12[%c0_12, %c0_13] : memref<32x128xf32, #tpu.memory_space<vmem>>, vector<32x128xf32>
        %21 = arith.truncf %20 : vector<32x128xf32> to vector<32x128xbf16>
        %22 = tpu.iota {dimensions = array<i32: 1>} : vector<1x128xi32>
        %cst_14 = arith.constant 0.000000e+00 : f32
        %23 = vector.broadcast %cst_14 : f32 to vector<64x128xf32>
        %c0_15 = arith.constant 0 : index
        %c0_16 = arith.constant 0 : index
        %c0_17 = arith.constant 0 : index
        %24 = vector.load %arg6[%c0_15, %c0_16, %c0_17] : memref<4x8x32xbf16, #tpu.memory_space<vmem>>, vector<1x8x32xbf16>
        %25 = vector.shape_cast %24 : vector<1x8x32xbf16> to vector<8x32xbf16>
        %cst_18 = arith.constant dense<0.000000e+00> : vector<8x128xf32>
        %26 = tpu.matmul %25, %21, %cst_18 {dimension_numbers = #tpu.dot_dimension_numbers<[1], [0], [0], [1], [0, 0, 1, 1], [], []>} : vector<8x32xbf16>, vector<32x128xbf16>, vector<8x128xf32> -> vector<8x128xf32>
        %c0_19 = arith.constant 0 : index
        %c0_20 = arith.constant 0 : index
        %c0_21 = arith.constant 0 : index
        %27 = vector.load %arg7[%c0_19, %c0_20, %c0_21] : memref<4x8x1xf32, #tpu.memory_space<vmem>>, vector<1x8x1xf32>
        %28 = vector.shape_cast %27 : vector<1x8x1xf32> to vector<8x1xf32>
        %29 = vector.broadcast %28 : vector<8x1xf32> to vector<8x128xf32>
        %30 = arith.addf %26, %29 : vector<8x128xf32>
        %cst_22 = arith.constant 0.000000e+00 : f32
        %31 = vector.broadcast %cst_22 : f32 to vector<8x128xf32>
        %32 = arith.maximumf %30, %31 : vector<8x128xf32>
        %33 = arith.truncf %32 : vector<8x128xf32> to vector<8x128xbf16>
        %c0_23 = arith.constant 0 : index
        %c0_24 = arith.constant 0 : index
        %c0_25 = arith.constant 0 : index
        %34 = vector.load %arg9[%c0_23, %c0_24, %c0_25] : memref<4x64x8xbf16, #tpu.memory_space<vmem>>, vector<1x64x8xbf16>
        %35 = vector.shape_cast %34 : vector<1x64x8xbf16> to vector<64x8xbf16>
        %cst_26 = arith.constant dense<0.000000e+00> : vector<64x128xf32>
        %36 = tpu.matmul %35, %33, %cst_26 {dimension_numbers = #tpu.dot_dimension_numbers<[1], [0], [0], [1], [0, 0, 1, 1], [], []>} : vector<64x8xbf16>, vector<8x128xbf16>, vector<64x128xf32> -> vector<64x128xf32>
        %c0_i32_27 = arith.constant 0 : i32
        %37 = vector.broadcast %c0_i32_27 : i32 to vector<1x128xi32>
        %38 = arith.cmpi sge, %22, %37 : vector<1x128xi32>
        %c8_i32 = arith.constant 8 : i32
        %39 = vector.broadcast %c8_i32 : i32 to vector<1x128xi32>
        %40 = arith.cmpi slt, %22, %39 : vector<1x128xi32>
        %41 = arith.andi %38, %40 : vector<1x128xi1>
        %cst_28 = arith.constant 0.000000e+00 : f32
        %42 = vector.shape_cast %41 : vector<1x128xi1> to vector<1x128xi1>
        %43 = vector.broadcast %42 : vector<1x128xi1> to vector<64x128xi1>
        %44 = vector.broadcast %cst_28 : f32 to vector<64x128xf32>
        %45 = arith.select %43, %36, %44 : vector<64x128xi1>, vector<64x128xf32>
        %46 = arith.addf %23, %45 : vector<64x128xf32>
        %c1 = arith.constant 1 : index
        %c0_29 = arith.constant 0 : index
        %c0_30 = arith.constant 0 : index
        %47 = vector.load %arg6[%c1, %c0_29, %c0_30] : memref<4x8x32xbf16, #tpu.memory_space<vmem>>, vector<1x8x32xbf16>
        %48 = vector.shape_cast %47 : vector<1x8x32xbf16> to vector<8x32xbf16>
        %cst_31 = arith.constant dense<0.000000e+00> : vector<8x128xf32>
        %49 = tpu.matmul %48, %21, %cst_31 {dimension_numbers = #tpu.dot_dimension_numbers<[1], [0], [0], [1], [0, 0, 1, 1], [], []>} : vector<8x32xbf16>, vector<32x128xbf16>, vector<8x128xf32> -> vector<8x128xf32>
        %c1_32 = arith.constant 1 : index
        %c0_33 = arith.constant 0 : index
        %c0_34 = arith.constant 0 : index
        %50 = vector.load %arg7[%c1_32, %c0_33, %c0_34] : memref<4x8x1xf32, #tpu.memory_space<vmem>>, vector<1x8x1xf32>
        %51 = vector.shape_cast %50 : vector<1x8x1xf32> to vector<8x1xf32>
        %52 = vector.broadcast %51 : vector<8x1xf32> to vector<8x128xf32>
        %53 = arith.addf %49, %52 : vector<8x128xf32>
        %cst_35 = arith.constant 0.000000e+00 : f32
        %54 = vector.broadcast %cst_35 : f32 to vector<8x128xf32>
        %55 = arith.maximumf %53, %54 : vector<8x128xf32>
        %56 = arith.truncf %55 : vector<8x128xf32> to vector<8x128xbf16>
        %c1_36 = arith.constant 1 : index
        %c0_37 = arith.constant 0 : index
        %c0_38 = arith.constant 0 : index
        %57 = vector.load %arg9[%c1_36, %c0_37, %c0_38] : memref<4x64x8xbf16, #tpu.memory_space<vmem>>, vector<1x64x8xbf16>
        %58 = vector.shape_cast %57 : vector<1x64x8xbf16> to vector<64x8xbf16>
        %cst_39 = arith.constant dense<0.000000e+00> : vector<64x128xf32>
        %59 = tpu.matmul %58, %56, %cst_39 {dimension_numbers = #tpu.dot_dimension_numbers<[1], [0], [0], [1], [0, 0, 1, 1], [], []>} : vector<64x8xbf16>, vector<8x128xbf16>, vector<64x128xf32> -> vector<64x128xf32>
        %c8_i32_40 = arith.constant 8 : i32
        %60 = vector.broadcast %c8_i32_40 : i32 to vector<1x128xi32>
        %61 = arith.cmpi sge, %22, %60 : vector<1x128xi32>
        %c16_i32 = arith.constant 16 : i32
        %62 = vector.broadcast %c16_i32 : i32 to vector<1x128xi32>
        %63 = arith.cmpi slt, %22, %62 : vector<1x128xi32>
        %64 = arith.andi %61, %63 : vector<1x128xi1>
        %cst_41 = arith.constant 0.000000e+00 : f32
        %65 = vector.shape_cast %64 : vector<1x128xi1> to vector<1x128xi1>
        %66 = vector.broadcast %65 : vector<1x128xi1> to vector<64x128xi1>
        %67 = vector.broadcast %cst_41 : f32 to vector<64x128xf32>
        %68 = arith.select %66, %59, %67 : vector<64x128xi1>, vector<64x128xf32>
        %69 = arith.addf %46, %68 : vector<64x128xf32>
        %c2 = arith.constant 2 : index
        %c0_42 = arith.constant 0 : index
        %c0_43 = arith.constant 0 : index
        %70 = vector.load %arg6[%c2, %c0_42, %c0_43] : memref<4x8x32xbf16, #tpu.memory_space<vmem>>, vector<1x8x32xbf16>
        %71 = vector.shape_cast %70 : vector<1x8x32xbf16> to vector<8x32xbf16>
        %cst_44 = arith.constant dense<0.000000e+00> : vector<8x128xf32>
        %72 = tpu.matmul %71, %21, %cst_44 {dimension_numbers = #tpu.dot_dimension_numbers<[1], [0], [0], [1], [0, 0, 1, 1], [], []>} : vector<8x32xbf16>, vector<32x128xbf16>, vector<8x128xf32> -> vector<8x128xf32>
        %c2_45 = arith.constant 2 : index
        %c0_46 = arith.constant 0 : index
        %c0_47 = arith.constant 0 : index
        %73 = vector.load %arg7[%c2_45, %c0_46, %c0_47] : memref<4x8x1xf32, #tpu.memory_space<vmem>>, vector<1x8x1xf32>
        %74 = vector.shape_cast %73 : vector<1x8x1xf32> to vector<8x1xf32>
        %75 = vector.broadcast %74 : vector<8x1xf32> to vector<8x128xf32>
        %76 = arith.addf %72, %75 : vector<8x128xf32>
        %cst_48 = arith.constant 0.000000e+00 : f32
        %77 = vector.broadcast %cst_48 : f32 to vector<8x128xf32>
        %78 = arith.maximumf %76, %77 : vector<8x128xf32>
        %79 = arith.truncf %78 : vector<8x128xf32> to vector<8x128xbf16>
        %c2_49 = arith.constant 2 : index
        %c0_50 = arith.constant 0 : index
        %c0_51 = arith.constant 0 : index
        %80 = vector.load %arg9[%c2_49, %c0_50, %c0_51] : memref<4x64x8xbf16, #tpu.memory_space<vmem>>, vector<1x64x8xbf16>
        %81 = vector.shape_cast %80 : vector<1x64x8xbf16> to vector<64x8xbf16>
        %cst_52 = arith.constant dense<0.000000e+00> : vector<64x128xf32>
        %82 = tpu.matmul %81, %79, %cst_52 {dimension_numbers = #tpu.dot_dimension_numbers<[1], [0], [0], [1], [0, 0, 1, 1], [], []>} : vector<64x8xbf16>, vector<8x128xbf16>, vector<64x128xf32> -> vector<64x128xf32>
        %c16_i32_53 = arith.constant 16 : i32
        %83 = vector.broadcast %c16_i32_53 : i32 to vector<1x128xi32>
        %84 = arith.cmpi sge, %22, %83 : vector<1x128xi32>
        %c32_i32 = arith.constant 32 : i32
        %85 = vector.broadcast %c32_i32 : i32 to vector<1x128xi32>
        %86 = arith.cmpi slt, %22, %85 : vector<1x128xi32>
        %87 = arith.andi %84, %86 : vector<1x128xi1>
        %cst_54 = arith.constant 0.000000e+00 : f32
        %88 = vector.shape_cast %87 : vector<1x128xi1> to vector<1x128xi1>
        %89 = vector.broadcast %88 : vector<1x128xi1> to vector<64x128xi1>
        %90 = vector.broadcast %cst_54 : f32 to vector<64x128xf32>
        %91 = arith.select %89, %82, %90 : vector<64x128xi1>, vector<64x128xf32>
        %92 = arith.addf %69, %91 : vector<64x128xf32>
        %c3 = arith.constant 3 : index
        %c0_55 = arith.constant 0 : index
        %c0_56 = arith.constant 0 : index
        %93 = vector.load %arg6[%c3, %c0_55, %c0_56] : memref<4x8x32xbf16, #tpu.memory_space<vmem>>, vector<1x8x32xbf16>
        %94 = vector.shape_cast %93 : vector<1x8x32xbf16> to vector<8x32xbf16>
        %cst_57 = arith.constant dense<0.000000e+00> : vector<8x128xf32>
        %95 = tpu.matmul %94, %21, %cst_57 {dimension_numbers = #tpu.dot_dimension_numbers<[1], [0], [0], [1], [0, 0, 1, 1], [], []>} : vector<8x32xbf16>, vector<32x128xbf16>, vector<8x128xf32> -> vector<8x128xf32>
        %c3_58 = arith.constant 3 : index
        %c0_59 = arith.constant 0 : index
        %c0_60 = arith.constant 0 : index
        %96 = vector.load %arg7[%c3_58, %c0_59, %c0_60] : memref<4x8x1xf32, #tpu.memory_space<vmem>>, vector<1x8x1xf32>
        %97 = vector.shape_cast %96 : vector<1x8x1xf32> to vector<8x1xf32>
        %98 = vector.broadcast %97 : vector<8x1xf32> to vector<8x128xf32>
        %99 = arith.addf %95, %98 : vector<8x128xf32>
        %cst_61 = arith.constant 0.000000e+00 : f32
        %100 = vector.broadcast %cst_61 : f32 to vector<8x128xf32>
        %101 = arith.maximumf %99, %100 : vector<8x128xf32>
        %102 = arith.truncf %101 : vector<8x128xf32> to vector<8x128xbf16>
        %c3_62 = arith.constant 3 : index
        %c0_63 = arith.constant 0 : index
        %c0_64 = arith.constant 0 : index
        %103 = vector.load %arg9[%c3_62, %c0_63, %c0_64] : memref<4x64x8xbf16, #tpu.memory_space<vmem>>, vector<1x64x8xbf16>
        %104 = vector.shape_cast %103 : vector<1x64x8xbf16> to vector<64x8xbf16>
        %cst_65 = arith.constant dense<0.000000e+00> : vector<64x128xf32>
        %105 = tpu.matmul %104, %102, %cst_65 {dimension_numbers = #tpu.dot_dimension_numbers<[1], [0], [0], [1], [0, 0, 1, 1], [], []>} : vector<64x8xbf16>, vector<8x128xbf16>, vector<64x128xf32> -> vector<64x128xf32>
        %c32_i32_66 = arith.constant 32 : i32
        %106 = vector.broadcast %c32_i32_66 : i32 to vector<1x128xi32>
        %107 = arith.cmpi sge, %22, %106 : vector<1x128xi32>
        %c128_i32 = arith.constant 128 : i32
        %108 = vector.broadcast %c128_i32 : i32 to vector<1x128xi32>
        %109 = arith.cmpi slt, %22, %108 : vector<1x128xi32>
        %110 = arith.andi %107, %109 : vector<1x128xi1>
        %cst_67 = arith.constant 0.000000e+00 : f32
        %111 = vector.shape_cast %110 : vector<1x128xi1> to vector<1x128xi1>
        %112 = vector.broadcast %111 : vector<1x128xi1> to vector<64x128xi1>
        %113 = vector.broadcast %cst_67 : f32 to vector<64x128xf32>
        %114 = arith.select %112, %105, %113 : vector<64x128xi1>, vector<64x128xf32>
        %115 = arith.addf %92, %114 : vector<64x128xf32>
        %116 = arith.truncf %115 : vector<64x128xf32> to vector<64x128xbf16>
        %c0_68 = arith.constant 0 : index
        %c0_69 = arith.constant 0 : index
        %117 = vector.load %arg13[%c0_68, %c0_69] : memref<64x128xbf16, #tpu.memory_space<vmem>>, vector<64x128xbf16>
        tpu.vector_store %arg13[%c0_68, %c0_69], %116 {strides = array<i32>} : memref<64x128xbf16, #tpu.memory_space<vmem>>, vector<64x128xbf16>,
      } else {
      }
    } else {
    }
    %c1_i32 = arith.constant 1 : i32
    %6 = arith.cmpi eq, %arg1, %c1_i32 : i32
    %7 = arith.extui %6 : i1 to i32
    %c0_i32_3 = arith.constant 0 : i32
    %8 = arith.cmpi ne, %7, %c0_i32_3 : i32
    scf.if %8 {
      %c0_4 = arith.constant 0 : index
      %c0_5 = arith.constant 0 : index
      %9 = vector.load %arg8[%c0_4, %c0_5] : memref<64x32xbf16, #tpu.memory_space<vmem>>, vector<64x32xbf16>
      %cst = arith.constant dense<0.000000e+00> : vector<64x128xf32>
      %10 = tpu.matmul %9, %2, %cst {dimension_numbers = #tpu.dot_dimension_numbers<[1], [0], [0], [1], [0, 0, 1, 1], [], []>} : vector<64x32xbf16>, vector<32x128xbf16>, vector<64x128xf32> -> vector<64x128xf32>
      %c0_6 = arith.constant 0 : index
      %c0_7 = arith.constant 0 : index
      %11 = vector.load %arg13[%c0_6, %c0_7] : memref<64x128xbf16, #tpu.memory_space<vmem>>, vector<64x128xbf16>
      %c0_8 = arith.constant 0 : index
      %c0_9 = arith.constant 0 : index
      %12 = vector.load %arg5[%c0_8, %c0_9] : memref<128x128xbf16, #tpu.memory_space<vmem>>, vector<128x128xbf16>
      %cst_10 = arith.constant dense<0.000000e+00> : vector<64x128xf32>
      %13 = tpu.matmul %11, %12, %cst_10 {dimension_numbers = #tpu.dot_dimension_numbers<[1], [0], [0], [1], [0, 0, 1, 1], [], []>} : vector<64x128xbf16>, vector<128x128xbf16>, vector<64x128xf32> -> vector<64x128xf32>
      %14 = arith.addf %10, %13 : vector<64x128xf32>
      %c0_11 = arith.constant 0 : index
      %c0_12 = arith.constant 0 : index
      %15 = vector.load %arg10[%c0_11, %c0_12] : memref<64x1xf32, #tpu.memory_space<vmem>>, vector<64x1xf32>
      %16 = vector.broadcast %15 : vector<64x1xf32> to vector<64x128xf32>
      %17 = arith.addf %14, %16 : vector<64x128xf32>
      %cst_13 = arith.constant 0.000000e+00 : f32
      %18 = vector.broadcast %cst_13 : f32 to vector<64x128xf32>
      %19 = arith.maximumf %17, %18 : vector<64x128xf32>
      %20 = arith.truncf %19 : vector<64x128xf32> to vector<64x128xbf16>
      %c0_14 = arith.constant 0 : index
      %c0_15 = arith.constant 0 : index
      %c0_16 = arith.constant 0 : index
      %21 = vector.load %arg11[%c0_14, %c0_15, %c0_16] : memref<1x64x128xbf16, #tpu.memory_space<vmem>>, vector<1x64x128xbf16>
      %22 = vector.shape_cast %21 : vector<1x64x128xbf16> to vector<64x128xbf16>
      %23 = vector.shape_cast %20 : vector<64x128xbf16> to vector<1x64x128xbf16>
      tpu.vector_store %arg11[%c0_14, %c0_15, %c0_16], %23 {strides = array<i32>} : memref<1x64x128xbf16, #tpu.memory_space<vmem>>, vector<1x64x128xbf16>,
    } else {
    }
    return
  }
  func.func @transform_0(%arg0: i32, %arg1: i32, %arg2: i32) -> (i32, i32, i32) {
    %c0_i32 = arith.constant 0 : i32
    %c0_i32_0 = arith.constant 0 : i32
    return %arg0, %c0_i32, %arg2 : i32, i32, i32
  }
  func.func @transform_1(%arg0: i32, %arg1: i32, %arg2: i32) -> (i32, i32) {
    %c1_i32 = arith.constant 1 : i32
    %0 = arith.subi %c1_i32, %arg1 : i32
    %1 = arith.muli %0, %arg2 : i32
    %c0_i32 = arith.constant 0 : i32
    %c0_i32_0 = arith.constant 0 : i32
    return %1, %c0_i32 : i32, i32
  }
  func.func @transform_2(%arg0: i32, %arg1: i32, %arg2: i32) -> (i32, i32) {
    %0 = arith.muli %arg1, %arg2 : i32
    %c0_i32 = arith.constant 0 : i32
    %c0_i32_0 = arith.constant 0 : i32
    return %c0_i32, %0 : i32, i32
  }
  func.func @transform_3(%arg0: i32, %arg1: i32, %arg2: i32) -> (i32, i32, i32) {
    %c0_i32 = arith.constant 0 : i32
    %c0_i32_0 = arith.constant 0 : i32
    %c0_i32_1 = arith.constant 0 : i32
    %c0_i32_2 = arith.constant 0 : i32
    return %c0_i32, %c0_i32_0, %c0_i32_1 : i32, i32, i32
  }
  func.func @transform_4(%arg0: i32, %arg1: i32, %arg2: i32) -> (i32, i32, i32) {
    %c0_i32 = arith.constant 0 : i32
    %c0_i32_0 = arith.constant 0 : i32
    %c0_i32_1 = arith.constant 0 : i32
    %c0_i32_2 = arith.constant 0 : i32
    return %c0_i32, %c0_i32_0, %c0_i32_1 : i32, i32, i32
  }
  func.func @transform_5(%arg0: i32, %arg1: i32, %arg2: i32) -> (i32, i32) {
    %c0_i32 = arith.constant 0 : i32
    %c0_i32_0 = arith.constant 0 : i32
    %c0_i32_1 = arith.constant 0 : i32
    return %c0_i32, %c0_i32_0 : i32, i32
  }
  func.func @transform_6(%arg0: i32, %arg1: i32, %arg2: i32) -> (i32, i32, i32) {
    %c0_i32 = arith.constant 0 : i32
    %c0_i32_0 = arith.constant 0 : i32
    %c0_i32_1 = arith.constant 0 : i32
    %c0_i32_2 = arith.constant 0 : i32
    return %c0_i32, %c0_i32_0, %c0_i32_1 : i32, i32, i32
  }
  func.func @transform_7(%arg0: i32, %arg1: i32, %arg2: i32) -> (i32, i32) {
    %c0_i32 = arith.constant 0 : i32
    %c0_i32_0 = arith.constant 0 : i32
    %c0_i32_1 = arith.constant 0 : i32
    return %c0_i32, %c0_i32_0 : i32, i32
  }
  func.func @transform_8(%arg0: i32, %arg1: i32, %arg2: i32) -> (i32, i32, i32) {
    %0 = arith.muli %arg1, %arg2 : i32
    %c0_i32 = arith.constant 0 : i32
    %c0_i32_0 = arith.constant 0 : i32
    return %arg0, %c0_i32, %0 : i32, i32, i32
  }
}

</mosaic_0001>

<bundles_post_ra>
// kernel: tpu_custom_call.1
= control target key start
LH: loop header
LB: loop body
LE: loop exit
PB: predicated region body
PF: predicated region fallthrough
CT: control target
= control target key end

     0   :  { %s2925_s0 = inlined_call_operand.vmem [shape: f32[2,32,256], index: 0, kind: input, shape index: {}]   ;;  %s2926_s1 = inlined_call_operand.hbm [shape: bf16[256,128], index: 1, kind: input, shape index: {}]   ;;  %s2927_s2 = inlined_call_operand.hbm [shape: bf16[128,256], index: 2, kind: input, shape index: {}]   ;;  %s2928_s3 = inlined_call_operand.vmem [shape: bf16[4,8,32], index: 3, kind: input, shape index: {}]   ;;  %s2929_s4 = inlined_call_operand.vmem [shape: f32[4,8,1], index: 4, kind: input, shape index: {}]   ;;  %s2930_s5 = inlined_call_operand.vmem [shape: bf16[64,32], index: 5, kind: input, shape index: {}]   ;;  %s2931_s6 = inlined_call_operand.vmem [shape: bf16[4,64,8], index: 6, kind: input, shape index: {}]   ;;  %s2932_s7 = inlined_call_operand.vmem [shape: f32[64,1], index: 7, kind: input, shape index: {}]   ;;  %s2933_s8 = inlined_call_operand.hbm [shape: bf16[2,64,256], index: 8, kind: output, shape index: {}]  }
   0x1   :  { %2952 = sst [smem:[#allocation33_spill]] %s2925_s0 }
   0x2   :  { %2953 = sst [smem:[#allocation34_spill]] %s2927_s2 }
   0x3   :  { %2954 = sst [smem:[#allocation35_spill]] %s2928_s3 }
   0x4   :  { %2955 = sst [smem:[#allocation36_spill]] %s2929_s4 }
   0x5   :  { %2956 = sst [smem:[#allocation37_spill]] %s2930_s5 }
   0x6   :  { %2957 = sst [smem:[#allocation38_spill]] %s2931_s6 }
   0x7   :  { %2958 = sst [smem:[#allocation39_spill]] %s2932_s7 }
   0x8   :  { %2959 = sst [smem:[#allocation40_spill]] %s2933_s8 }
   0x9   :  { %13 = vsyncpa [#allocation6], 0 }
   0xa   :  { %15 = vsyncpa [#allocation6 + $0x1], 0 }
   0xb   :  { %16 = vsyncpa [#allocation9], 0 }
   0xc   :  { %18 = vsyncpa [#allocation9 + $0x1], 0 }
   0xd   :  { %19 = vsyncpa [#allocation7], 0 }
   0xe   :  { %21 = vsyncpa [#allocation7 + $0x1], 0  ;;  %s2346_s27 = smov 0   ;;  %s2348_s28 = smov 0  }
   0xf   :  { %s2350_s29 = smov 0   ;;  %s2352_s30 = smov 0  }
  0x10   :  { %s2354_s9 = smov 0   ;;  %s2356_s10 = smov 0  }
  0x11   :  { %s2358_s11 = smov 0   ;;  %s2360_s12 = smov 0  }
  0x12   :  { %s2362_s13 = smov 0   ;;  %s2364_s14 = smov 0  }
  0x13   :  { %s2366_s15 = smov 0   ;;  %s2368_s16 = smov 0  }
  0x14   :  { %s2370_s17 = smov 0   ;;  %s2372_s18 = smov 0  }
  0x15   :  { %s2374_s19 = smov 0   ;;  %s2376_s20 = smov 0  }
  0x16   :  { %s2378_s21 = smov 0   ;;  %s2380_s22 = smov 0  }
  0x17 LB: > { %2960 = sst [smem:[#allocation14_spill]] %s2223_s27  ;;  %s39_s25 = sadd.s32 1, %s2279_s19  ;;  %s2291_s22 = sphi %s2380_s22, %s27_s22   ;;  %s2287_s21 = sphi %s2378_s21, %s3040_s21   ;;  %s2283_s20 = sphi %s2376_s20, %s3028_s20   ;;  %s2279_s19 = sphi %s2374_s19, %s3027_s19   ;;  %s2275_s18 = sphi %s2372_s18, %s3026_s18   ;;  %s2271_s17 = sphi %s2370_s17, %s3039_s17   ;;  %s2267_s16 = sphi %s2368_s16, %s3024_s16   ;;  %s2263_s15 = sphi %s2366_s15, %s3023_s15   ;;  %s2259_s14 = sphi %s2364_s14, %s3038_s14   ;;  %s2255_s13 = sphi %s2362_s13, %s3021_s13   ;;  %s2251_s12 = sphi %s2360_s12, %s3037_s12   ;;  %s2247_s11 = sphi %s2358_s11, %s3036_s11   ;;  %s2243_s10 = sphi %s2356_s10, %s3035_s10   ;;  %s2239_s9 = sphi %s2354_s9, %s3034_s9   ;;  %s2235_s30 = sphi %s2352_s30, %s3033_s30   ;;  %s2231_s29 = sphi %s2350_s29, %s3018_s29   ;;  %s2227_s28 = sphi %s2348_s28, %s3031_s28   ;;  %s2223_s27 = sphi %s2346_s27, %s3029_s27  }
  0x18   : > { %2961 = sst [smem:[#allocation15_spill]] %s2231_s29  ;;  %s42_s26 = sadd.s32 1, %s2283_s20 }
  0x19   : > { %2962 = sst [smem:[#allocation16_spill]] %s2255_s13  ;;  %p40_p0 = scmp.ge.s32.totalorder %s39_s25, 2 }
  0x1a   : > { %2963 = sst [smem:[#allocation17_spill]] %s2259_s14  ;;  %s46_s8 = sadd.s32 1, %s2287_s21 }
  0x1b   : > { %2964 = sst [smem:[#allocation18_spill]] %s2263_s15  ;;  %p62_p1 = scmp.ne.s32.totalorder %s2263_s15, %s2259_s14 }
  0x1c   : > { %2965 = sst [smem:[#allocation19_spill]] %s2267_s16  ;;  %s3042_s25 = smov (%p40_p0, %s39_s25), 0 }
  0x1d   : > { %2966 = sst [smem:[#allocation20_spill]] %s2271_s17  ;;  %s3044_s26 = smov (!%p40_p0, %s42_s26), %s2283_s20 }
  0x1e   : > { %2967 = sst [smem:[#allocation21_spill]] %s2275_s18  ;;  %s55_s18 = sadd.s32 1, %s2263_s15 }
  0x1f   : > { %2968 = sst [smem:[#allocation22_spill]] %s2279_s19  ;;  %s51_s7 = ssub.s32 %s2279_s19, %s3042_s25 }
  0x20   : > { %2969 = sst [smem:[#allocation23_spill]] %s2283_s20  ;;  %p63_p2 = scmp.eq.s32.totalorder %s2291_s22, 0 }
  0x21   : > { %2970 = sst [smem:[#allocation24_spill]] %s2287_s21  ;;  %p44_p3 = scmp.ge.s32.totalorder %s3044_s26, 2 }
  0x22   : > { %2971 = sst [smem:[#allocation25_spill]] %s3042_s25  ;;  %s78_s24 = ssub.s32 1, %s2283_s20 }
  0x23   : > { %p2453_p4 = por %p63_p2, %p62_p1  ;;  %s2458_s5 = smul.u32 %s2279_s19, %s78_s24 }
  0x24   : > { %s3046_s26 = smov (%p44_p3, %s3044_s26), 0  ;;  %s3048_s8 = smov (!%p44_p3, %s46_s8), %s2287_s21 }
  0x25   : > { %2973 = sst [smem:[#allocation26_spill]] %s3046_s26  ;;  %s80_s6 = ssub.s32 1, %s3046_s26 }
  0x26   : > { %s85_s3 = sadd.s32 1, %s2255_s13  ;;  %p48_p5 = scmp.ge.s32.totalorder %s3048_s8, 2 }
  0x27   : > { %s81_s4 = smul.u32 %s80_s6, %s3042_s25  ;;  %p92_p6 = scmp.ne.s32.totalorder %s2255_s13, %s2251_s12 }
  0x28   : > { %p98_p7 = scmp.ne.s32.totalorder %s2251_s12, %s2247_s11  ;;  %s3050_s8 = smov (%p48_p5, %s3048_s8), 0 }
  0x29   : > { %2974 = sst [smem:[#allocation27_spill]] %s3050_s8  ;;  %s82_s24 = ssub.s32 %s2458_s5, %s81_s4 }
  0x2a   : > { %p2475_p8 = por %p92_p6, %p63_p2  ;;  %s50_s17 = ssub.s32 %s2287_s21, %s3050_s8 }
  0x2b   : > { %p83_p9 = scmp.eq.s32.totalorder %s82_s24, 0  ;;  %s52_s6 = sor.u32 %s51_s7, %s50_s17 }
  0x2c   : > { %s2976_s14 = sadd.s32 4294967295, %s2291_s22   ;;  %p53_p11 = scmp.eq.s32.totalorder %s52_s6, 0 }
  0x2d   : > { %p2483_p10 = scmp.eq.s32.totalorder %s2976_s14, 0  ;;  %s2489_s4 = smul.u32 %s2279_s19, %s2283_s20 }
  0x2e   : > { %s2492_s11 = scalar_select %p83_p9, %s2255_s13, %s85_s3  }
  0x2f   : > { %s2495_s24 = scalar_select %p53_p11, %s2263_s15, %s55_s18  }
  0x30   : > { %2978 = sst [smem:[#allocation28_spill]] %s2492_s11  ;;  %p2499_p12 = por %p2483_p10, %p98_p7 }
  0x31   : > { %2979 = sst [smem:[#allocation29_spill]] %s2495_s24  ;;  %s109_s14 = smul.u32 %s3046_s26, %s3042_s25 }
  0x32   : > { %s113_s6 = sadd.s32 1, %s2243_s10  ;;  %p120_p13 = scmp.ne.s32.totalorder %s2243_s10, %s2239_s9 }
  0x33   : > { %s110_s8 = ssub.s32 %s2489_s4, %s109_s14  ;;  %p126_p0 = scmp.ne.s32.totalorder %s2239_s9, %s2235_s30 }
  0x34   : > { %p111_p1 = scmp.eq.s32.totalorder %s110_s8, 0  ;;  %p2513_p3 = por %p120_p13, %p63_p2 }
  0x35   : > { %p2519_p5 = por %p126_p0, %p2483_p10  ;;  %s245_s20 = sor.u32 %s110_s8, %s50_s17 }
  0x36   : > { %s2524_s26 = scalar_select %p111_p1, %s2243_s10, %s113_s6  }
  0x37   : > { %p246_p6 = scmp.eq.s32.totalorder %s245_s20, 0  ;;  %s248_s25 = sadd.s32 1, %s2231_s29 }
  0x38   : > { %2983 = sst [smem:[#allocation30_spill]] %s2524_s26  ;;  %p258_p7 = scmp.ne.s32.totalorder %s2231_s29, %s2227_s28 }
  0x39   : > { %s2984_s24 = sadd.s32 4294967295, %s2291_s22   ;;  %p264_p2 = scmp.ne.s32.totalorder %s2227_s28, %s2223_s27 }
  0x3a   : > { %p259_p9 = scmp.eq.s32.totalorder %s2984_s24, 7  ;;  %s2987_s2 = sadd.s32 4294967294, %s2291_s22  }
  0x3b   : > { %s2532_s30 = scalar_select %p246_p6, %s2231_s29, %s248_s25  }
  0x3c   : > { %p2534_p11 = por %p259_p9, %p258_p7  ;;  %p265_p10 = scmp.eq.s32.totalorder %s2987_s2, 7 }
  0x3d   : > { %2985 = sst [smem:[#allocation31_spill]] %s2532_s30  ;;  %p1540_p0 = scmp.ge.s32.totalorder %s2291_s22, 8 }
  0x3e   : > { %p2542_p13 = por %p265_p10, %p264_p2 }
  0x3f   : > { %296 = sbr.rel (%p1540_p0) target bundleno = 98 (0x62), region = 36 }
  0x40   : > { %s2988_s11 = scalar_select %p2542_p13, 1, 0 }
  0x42   : > { %2989 = sst [smem:[#allocation32_spill]] %s2988_s11 }
  0x44   : > { %299 = sbr.rel (!%p2453_p4) target bundleno = 82 (0x52), region = 40  ;;  %s301_s8 = sand.u32 (%p2453_p4), 1, %s2263_s15  }
  0x45   : > { %s1542_s17 = sshll.u32 (%p2453_p4), %s2287_s21, 3  ;;  %s1541_s20 = sshll.u32 (%p2453_p4), %s301_s8, 5 }
  0x46   : > { %s305_s25 = sadd.s32 (%p2453_p4), %s2279_s19, %s1542_s17  ;;  %s2990_s0 = sld [smem:[#allocation33_spill]] (%p2453_p4) }
  0x47   : > { %s1543_s24 = sshll.u32 (%p2453_p4), %s305_s25, 3  ;;  %s303_s30 = scalar_lea.vmem (%p2453_p4), [#allocation4], %s1541_s20 }
  0x4c   : > { %s307_s26 = scalar_lea.vmem %s2990_s0, %s1543_s24 }
  0x4d   : > { %v342_v0 = vld [vmem:[%s307_s26] sm:$0xff]  ;;  %v344_v1 = vld [vmem:[%s307_s26 + $0x10] sm:$0xff] }
  0x4e   : > { %v346_v2 = vld [vmem:[%s307_s26 + $0x20] sm:$0xff]  ;;  %343 = vst [vmem:[%s303_s30] sm:$0xff] %v342_v0  ;;  %v348_v3 = vld [vmem:[%s307_s26 + $0x30] sm:$0xff] }
  0x4f   : > { %345 = vst [vmem:[%s303_s30 + $0x8] sm:$0xff] %v344_v1 }
  0x50   : > { %347 = vst [vmem:[%s303_s30 + $0x10] sm:$0xff] %v346_v2 }
  0x51   : > { %349 = vst [vmem:[%s303_s30 + $0x18] sm:$0xff] %v348_v3 }
  0x52 PF: > { %s356_s23 = sand.u32 1, %s2255_s13   ;;  %s1778_s8 = sshll.u32 %s2458_s5, 6 }
  0x53   : > { %s1544_s17 = sshll.u32 %s356_s23, 6  ;;  %s367_s6 = scalar_lea.hbm %s2926_s1, %s1778_s8 }
  0x54   : > { %s368_s2 = sshll.u32 %s367_s6, 4  ;;  %s360_s20 = scalar_lea.vmem [#allocation5], %s1544_s17  ;;  %s369_s2 = int_to_ptr.hbm [resolvable:$true] %s368_s2 }
  0x55   : > { %s370_s0 = sshll.u32 %s360_s20, 4  ;;  %s357_s26 = scalar_lea.sflag [#allocation6], %s356_s23  ;;  %s371_s0 = int_to_ptr.vmem [resolvable:$true] %s370_s0 }
  0x56   : > { %s2293_s30 = smov 64   ;;  %s2294_s21 = smov 4  }
  0x57   : > { %1885 = dma.hbm_to_vmem [thread:$0]  (%p2475_p8), %s369_s2, 1024, %s371_s0, %s357_s26, %s2293_s30, %s2293_s30, %s2294_s21  }
  0x58   : > { %s380_s19 = sand.u32 1, %s2243_s10   ;;  %s1548_s15 = sshll.u32 %s2489_s4, 2 }
  0x59   : > { %s1547_s13 = sshll.u32 %s380_s19, 6  ;;  %s2991_s11 = sld [smem:[#allocation34_spill]] }
  0x5a   : > { %s384_s8 = scalar_lea.vmem [#allocation8], %s1547_s13  ;;  %s381_s17 = scalar_lea.sflag [#allocation9], %s380_s19 }
  0x5b   : > { %s392_s24 = sshll.u32 %s384_s8, 4  ;;  %s2295_s6 = smov 128   ;;  %s393_s24 = int_to_ptr.vmem [resolvable:$true] %s392_s24 }
  0x5f   : > { %s389_s27 = scalar_lea.hbm %s2991_s11, %s1548_s15 }
  0x60   : > { %s390_s25 = sshll.u32 %s389_s27, 4  ;;  %s391_s25 = int_to_ptr.hbm [resolvable:$true] %s390_s25 }
  0x61   : > { %1886 = dma.hbm_to_vmem [thread:$0]  (%p2513_p3), %s391_s25, 1024, %s393_s24, %s381_s17, %s2295_s6, %s2293_s30, %s2294_s21  }
  0x62 PF: > { %p1549_p4 = scmp.ge.s32.totalorder %s2291_s22, 1  ;;  %p400_p8 = scmp.lt.s32.totalorder %s2291_s22, 9 }
  0x64   : > { %p401_p1 = pnand %p1549_p4, %p400_p8 }
  0x65   : > { %s2992_s0 = sld [smem:[#allocation17_spill]] (!%p401_p1)  ;;  %s413_s27 = sand.u32 (!%p401_p1), 1, %s2251_s12  }
  0x66   : > { %404 = sbr.rel (%p401_p1) target bundleno = 930 (0x3a2), region = 86  ;;  %s1551_s15 = sshll.u32 (!%p401_p1), %s413_s27, 6 }
  0x67   : > { %s414_s4 = scalar_lea.sflag (!%p401_p1), [#allocation6], %s413_s27  ;;  %s2573_s19 = scalar_lea.vmem (!%p401_p1), [#allocation5], %s1551_s15 }
  0x6b   : > { %s407_s29 = sand.u32 1, %s2992_s0  }
  0x6c   : > { %s1550_s13 = sshll.u32 %s407_s29, 5 }
  0x6d   : > { %s409_s16 = scalar_lea.vmem [#allocation4], %s1550_s13 }
  0x6e   : > { %2210 = dma.done.wait (%p2499_p12), %s414_s4, 1024  }
  0x6f   : > { %2212 = vsyncadd (%p2499_p12), %s414_s4, 4294966272  ;;  %s423_s21 = sand.u32 1, %s2239_s9  }
  0x70   : > { %s1552_s11 = sshll.u32 %s423_s21, 6  ;;  %s424_s3 = scalar_lea.sflag [#allocation9], %s423_s21 }
  0x71   : > { %s2580_s23 = scalar_lea.vmem [#allocation8], %s1552_s11 }
  0x72   : > { %2214 = dma.done.wait (%p2519_p5), %s424_s3, 1024  }
  0x73   : > { %2216 = vsyncadd (%p2519_p5), %s424_s3, 4294966272  ;;  %s467_s2 = sand.u32 1, %s2227_s28   ;;  %v476_v4 = vld [vmem:[%s409_s16] sm:$0xff]  ;;  %v477_v5 = vld [vmem:[%s409_s16 + $0x8] sm:$0xff]  ;;  %s2993_s26 = sld [smem:[#allocation20_spill]] }
  0x74   : > { %s1553_s20 = sshll.u32 %s467_s2, 5  ;;  %v478_v6 = vld [vmem:[%s409_s16 + $0x10] sm:$0xff]  ;;  %v479_v7 = vld [vmem:[%s409_s16 + $0x18] sm:$0xff]  ;;  %v2589_v8 = vpack.c.bf16 %v477_v5, %v476_v4 }
  0x75   : > { %v2591_v9 = vpack.c.bf16 %v479_v7, %v478_v6  ;;  %s2593_s7 = scalar_lea.vmem [#allocation10], %s1553_s20 }
  0x79   : > { %p1554_p12 = scmp.ne.s32.totalorder %s2993_s26, 0 }
  0x7a   : > { %s2994_s18 = sld [smem:[#allocation19_spill]] (!%p1554_p12) }
  0x7b   : > { %485 = sbr.rel (%p1554_p12) target bundleno = 693 (0x2b5), region = 102 }
  0x80   : > { %v1786_v10 = vld [vmem:[%s2573_s19 + $0x38] sm:$0xff]  ;;  %v1785_v11 = vld [vmem:[%s2573_s19 + $0x30] sm:$0xff]  ;;  %v1784_v12 = vld [vmem:[%s2573_s19 + $0x28] sm:$0xff]  ;;  %p1587_p3 = scmp.ne.s32.totalorder %s2994_s18, 0 }
  0x81   : > { %550 = vmatpush.bf16.msra.mxu0 %v1786_v10  ;;  %1865 = vmatpush.bf16.msra.mxu1 %v1786_v10  ;;  %v1783_v13 = vld [vmem:[%s2573_s19 + $0x20] sm:$0xff]  ;;  %v1782_v14 = vld [vmem:[%s2573_s19 + $0x18] sm:$0xff]  ;;  %v1781_v15 = vld [vmem:[%s2573_s19 + $0x10] sm:$0xff] }
  0x82   : > { %v1780_v16 = vld [vmem:[%s2573_s19 + $0x8] sm:$0xff]  ;;  %v1779_v17 = vld [vmem:[%s2573_s19] sm:$0xff] }
  0x85   : > { %551 = vmatpush.bf16.msra.mxu0 %v1785_v11  ;;  %1866 = vmatpush.bf16.msra.mxu1 %v1785_v11 }
  0x89   : > { %552 = vmatpush.bf16.msra.mxu0 %v1784_v12  ;;  %1867 = vmatpush.bf16.msra.mxu1 %v1784_v12 }
  0x8d   : > { %553 = vmatpush.bf16.msra.mxu0 %v1783_v13  ;;  %1868 = vmatpush.bf16.msra.mxu1 %v1783_v13 }
  0x91   : > { %554 = vmatpush.bf16.msra.mxu0 %v1782_v14  ;;  %1869 = vmatpush.bf16.msra.mxu1 %v1782_v14 }
  0x95   : > { %555 = vmatpush.bf16.msra.mxu0 %v1781_v15  ;;  %1870 = vmatpush.bf16.msra.mxu1 %v1781_v15 }
  0x99   : > { %556 = vmatpush.bf16.msra.mxu0 %v1780_v16  ;;  %1871 = vmatpush.bf16.msra.mxu1 %v1780_v16 }
  0x9d   : > { %557 = vmatpush.bf16.msra.mxu0 %v1779_v17  ;;  %1872 = vmatpush.bf16.msra.mxu1 %v1779_v17 }
  0xa0   : > { %558 = vmatmul.bf16.vlgmr.msra.gmra.mxu0 %v2589_v8  ;;  %563 = vmatmul.bf16.vlgmr.msra.gmra.mxu1 %v2591_v9 }
 0x11d   : > { %v559_v18 = vpop.f32.mrf.mxu0  ;;  %v564_v19 = vpop.f32.mrf.mxu1 }
 0x121   : > { %572 = sbr.rel (%p1587_p3) target bundleno = 298 (0x12a), region = 106 }
 0x125   : > { %v561_v20 = vpop.f32.mrf.mxu0  ;;  %v566_v21 = vpop.f32.mrf.mxu1 }
 0x126   : > { %573 = vst [vmem:[#allocation2 + $0x10] sm:$0xff] %v559_v18 }
 0x127   : > { %574 = vst [vmem:[#allocation2] sm:$0xff] %v561_v20 }
 0x128   : > { %575 = vst [vmem:[#allocation2 + $0x18] sm:$0xff] %v564_v19 }
 0x129   : > { %576 = vst [vmem:[#allocation2 + $0x8] sm:$0xff] %v566_v21 }
 0x12a PF: > { %s2995_s30 = sld [smem:[#allocation19_spill]] }
 0x130   : > { %p1588_p5 = scmp.eq.s32.totalorder %s2995_s30, 0 }
 0x132   : > { %580 = sbr.rel (%p1588_p5) target bundleno = 318 (0x13e), region = 110 }
 0x137   : > { %v581_v22 = vld [vmem:[#allocation2 + $0x10] sm:$0xff]  ;;  %v582_v23 = vld [vmem:[#allocation2] sm:$0xff]  ;;  %v583_v24 = vld [vmem:[#allocation2 + $0x18] sm:$0xff] }
 0x138   : > { %v585_v25 = vadd.f32 %v581_v22, %v559_v18  ;;  %v586_v26 = vadd.f32 %v582_v23, %v561_v20  ;;  %v587_v27 = vadd.f32 %v583_v24, %v564_v19  ;;  %v584_v28 = vld [vmem:[#allocation2 + $0x8] sm:$0xff] }
 0x139   : > { %v588_v29 = vadd.f32 %v584_v28, %v566_v21 }
 0x13a   : > { %589 = vst [vmem:[#allocation2 + $0x10] sm:$0xff] %v585_v25 }
 0x13b   : > { %590 = vst [vmem:[#allocation2] sm:$0xff] %v586_v26 }
 0x13c   : > { %591 = vst [vmem:[#allocation2 + $0x18] sm:$0xff] %v587_v27 }
 0x13d   : > { %592 = vst [vmem:[#allocation2 + $0x8] sm:$0xff] %v588_v29 }
 0x13e PF: > { %s2996_s5 = sld [smem:[#allocation19_spill]] }
 0x144   : > { %p1589_p6 = scmp.ne.s32.totalorder %s2996_s5, 1 }
 0x145   : > { %s2997_s24 = sld [smem:[#allocation36_spill]] (!%p1589_p6) }
 0x146   : > { %596 = sbr.rel (%p1589_p6) target bundleno = 693 (0x2b5), region = 114  ;;  %s2998_s27 = sld [smem:[#allocation35_spill]] (!%p1589_p6) }
 0x147   : > { %s3000_s25 = sld [smem:[#allocation38_spill]] (!%p1589_p6) }
 0x14b   : > { %v599_v30 = vld [vmem:[#allocation2 + $0x18] sm:$0xff]  ;;  %v600_v31 = vld [vmem:[#allocation2 + $0x8] sm:$0xff]  ;;  %v597_v32 = vld [vmem:[#allocation2 + $0x10] sm:$0xff]  ;;  %v2296_v35 = vmov 0   ;;  %vm612_vm0 = vcmask 261120   ;;  %vm672_vm1 = vcmask 1043456  }
 0x14c   : > { %v602_v33 = vpack.c.bf16 %v600_v31, %v599_v30  ;;  %v598_v34 = vld [vmem:[#allocation2] sm:$0xff]  ;;  %2048 = vset.pattern.permute.xlu0 %v2296_v35  ;;  %v1612_v36 = vld [vmem:[%s2997_s24 + $0x8] sm:$0xff]  ;;  %2049 = vset.pattern.permute.xlu1 %v2296_v35  ;;  %v1643_v38 = vld [vmem:[%s2997_s24 + $0x10] sm:$0xff]  ;;  %s2999_s4 = smov %s2998_s27  ;;  %vm659_vm2 = vcmask 64512  }
 0x14d   : > { %732 = vperm.xlu0 %2048, %v1612_v36   ;;  %v601_v37 = vpack.c.bf16 %v598_v34, %v597_v32  ;;  %853 = vperm.xlu1 %2049, %v1643_v38   ;;  %v605_v39 = vld [vmem:[%s2998_s27] sm:$0xf]  ;;  %v1611_v40 = vld [vmem:[%s2999_s4 + $0x4] sm:$0xf]  ;;  %v1674_v42 = vld [vmem:[%s2997_s24 + $0x18] sm:$0xff]  ;;  %v603_v32 = vlaneseq }
 0x14e   : > { %622 = vmatpush.bf16.msra.mxu0 %v602_v33  ;;  %744 = vmatpush.bf16.msra.mxu2 %v602_v33  ;;  %v606_v41 = vld [vmem:[%s2997_s24] sm:$0xff]  ;;  %v1642_v43 = vld [vmem:[%s2999_s4 + $0x8] sm:$0xf]  ;;  %v1673_v44 = vld [vmem:[%s2999_s4 + $0xc] sm:$0xf] }
 0x14f   : > { %v1787_v54 = vld [vmem:[%s3000_s25] sm:$0xff]  ;;  %v1788_v3 = vld [vmem:[%s3000_s25 + $0x8] sm:$0xff]  ;;  %v1789_v15 = vld [vmem:[%s3000_s25 + $0x10] sm:$0xff]  ;;  %v2705_v35 = vand.u32 127, %v603_v32 }
 0x150   : > { %v1791_v59 = vld [vmem:[%s3000_s25 + $0x20] sm:$0xff]  ;;  %v1792_v6 = vld [vmem:[%s3000_s25 + $0x28] sm:$0xff]  ;;  %v1793_v19 = vld [vmem:[%s3000_s25 + $0x30] sm:$0xff] }
 0x151   : > { %v1795_v4 = vld [vmem:[%s3000_s25 + $0x40] sm:$0xff]  ;;  %v1796_v18 = vld [vmem:[%s3000_s25 + $0x48] sm:$0xff]  ;;  %v1790_v20 = vld [vmem:[%s3000_s25 + $0x18] sm:$0xff]  ;;  %vm826_vm3 = vcmp.ge.s32.totalorder %v2705_v35, 8  ;;  %vm827_vm4 = vcmp.lt.s32.totalorder %v2705_v35, 16  ;;  %vm947_vm5 = vcmp.ge.s32.totalorder %v2705_v35, 16 }
 0x152   : > { %623 = vmatpush.bf16.msra.mxu0 %v601_v37  ;;  %745 = vmatpush.bf16.msra.mxu2 %v601_v37  ;;  %v1799_v16 = vld [vmem:[%s3000_s25 + $0x60] sm:$0xff]  ;;  %v1800_v21 = vld [vmem:[%s3000_s25 + $0x68] sm:$0xff]  ;;  %v1797_v22 = vld [vmem:[%s3000_s25 + $0x50] sm:$0xff]  ;;  %vm948_vm6 = vcmp.lt.s32.totalorder %v2705_v35, 32  ;;  %vm706_vm7 = vcmp.lt.s32.totalorder %v2705_v35, 8  ;;  %vm1068_vm10 = vcmp.ge.s32.totalorder %v2705_v35, 32 }
 0x153   : > { %v1794_v23 = vld [vmem:[%s3000_s25 + $0x38] sm:$0xff]  ;;  %v1801_v24 = vld [vmem:[%s3000_s25 + $0x70] sm:$0xff]  ;;  %vm2712_vm8 = vmand %vm826_vm3, %vm827_vm4 }
 0x154   : > { %v1798_v25 = vld [vmem:[%s3000_s25 + $0x58] sm:$0xff]  ;;  %vm2716_vm9 = vmand %vm947_vm5, %vm948_vm6 }
 0x155   : > { %1590 = vmatmul.msk.bf16.vlgmr.msra.gmra.mxu0 %vm612_vm0, %v605_v39  ;;  %1613 = vmatmul.msk.bf16.vlgmr.msra.gmra.mxu2 %vm612_vm0, %v1611_v40  ;;  %v1802_v26 = vld [vmem:[%s3000_s25 + $0x78] sm:$0xff] }
 0x156   : > { %865 = vmatpush.bf16.msrb.mxu0 %v602_v33  ;;  %609 = vperm.xlu0 %2048, %v606_v41  }
 0x157   : > { %974 = vperm.xlu1 %2049, %v1674_v42  }
 0x15a   : > { %866 = vmatpush.bf16.msrb.mxu0 %v601_v37 }
 0x15e   : > { %986 = vmatpush.bf16.msra.mxu0 %v602_v33 }
 0x162   : > { %987 = vmatpush.bf16.msra.mxu0 %v601_v37 }
 0x165   : > { %1644 = vmatmul.msk.bf16.vlgmr.msrb.gmra.mxu0 %vm612_vm0, %v1642_v43 }
 0x175   : > { %1675 = vmatmul.msk.bf16.vlgmr.msra.gmra.mxu0 %vm612_vm0, %v1673_v44 }
 0x1bf   : > { %v733_v45 = vpop.permute.xlu0 %732  ;;  %v854_v61 = vpop.permute.xlu1 %853 }
 0x1c8   : > { %v610_v46 = vpop.permute.xlu0 %609 }
 0x1c9   : > { %v975_v7 = vpop.permute.xlu1 %974 }
 0x1d2   : > { %v625_v47 = vpop.f32.mrf.mxu0 }
 0x1d3   : > { %v626_v48 = vadd.f32 %v625_v47, %v610_v46 }
 0x1d5   : > { %v629_v49 = vmax.f32 %v626_v48, 0.0 }
 0x1d7   : > { %v630_v50 = vpack.c.bf16 %v629_v49, %v629_v49 }
 0x1d8   : > { %v747_v51 = vpop.f32.mrf.mxu2 }
 0x1d9   : > { %v674_v52 = vsel %vm672_vm1, %v630_v50, 0  ;;  %v748_v53 = vadd.f32 %v747_v51, %v733_v45 }
 0x1da   : > { %v627_v55 = vpop.f32.mrf.mxu0  ;;  %683 = vmatpush.bf16.msra.mxu1 %v674_v52 }
 0x1db   : > { %v751_v56 = vmax.f32 %v748_v53, 0.0 }
 0x1dd   : > { %v752_v57 = vpack.c.bf16 %v751_v56, %v751_v56  ;;  %1607 = vmatmul.msk.bf16.vlgmr.msra.gmra.mxu1 %vm659_vm2, %v1787_v54 }
 0x1df   : > { %v795_v58 = vsel %vm672_vm1, %v752_v57, 0 }
 0x1e0   : > { %804 = vmatpush.bf16.msra.mxu3 %v795_v58  ;;  %v749_v60 = vpop.f32.mrf.mxu2 }
 0x1e2   : > { %v868_v62 = vpop.f32.mrf.mxu0 }
 0x1e3   : > { %v869_v63 = vadd.f32 %v868_v62, %v854_v61  ;;  %1638 = vmatmul.msk.bf16.vlgmr.msra.gmra.mxu3 %vm659_vm2, %v1791_v59 }
 0x1e5   : > { %v872_v0 = vmax.f32 %v869_v63, 0.0 }
 0x1e7   : > { %v873_v1 = vpack.c.bf16 %v872_v0, %v872_v0 }
 0x1e9   : > { %v916_v2 = vsel %vm672_vm1, %v873_v1, 0 }
 0x1ea   : > { %v870_v5 = vpop.f32.mrf.mxu0  ;;  %925 = vmatpush.bf16.msrb.mxu2 %v916_v2 }
 0x1ed   : > { %1608 = vmatmul.msk.bf16.gmra.mxu1 %vm659_vm2, %v1788_v3  ;;  %1669 = vmatmul.msk.bf16.vlgmr.msrb.gmra.mxu2 %vm659_vm2, %v1795_v4 }
 0x1f2   : > { %v989_v10 = vpop.f32.mrf.mxu0 }
 0x1f3   : > { %v990_v11 = vadd.f32 %v989_v10, %v975_v7  ;;  %1639 = vmatmul.msk.bf16.gmra.mxu3 %vm659_vm2, %v1792_v6 }
 0x1f5   : > { %v993_v12 = vmax.f32 %v990_v11, 0.0 }
 0x1f7   : > { %v994_v13 = vpack.c.bf16 %v993_v12, %v993_v12 }
 0x1f9   : > { %v1037_v14 = vsel %vm672_vm1, %v994_v13, 0 }
 0x1fa   : > { %v991_v17 = vpop.f32.mrf.mxu0  ;;  %1046 = vmatpush.bf16.msrb.mxu0 %v1037_v14  ;;  %1873 = vmatpush.bf16.msrb.mxu1 %v1037_v14 }
 0x1fb   : > { %1874 = vmatpush.bf16.msrb.mxu3 %v1037_v14 }
 0x1fd   : > { %1609 = vmatmul.msk.bf16.gmra.mxu1 %vm659_vm2, %v1789_v15  ;;  %1700 = vmatmul.msk.bf16.vlgmr.msrb.gmra.mxu0 %vm659_vm2, %v1799_v16 }
 0x1fe   : > { %1670 = vmatmul.msk.bf16.gmra.mxu2 %vm659_vm2, %v1796_v18 }
 0x203   : > { %1640 = vmatmul.msk.bf16.gmra.mxu3 %vm659_vm2, %v1793_v19 }
 0x20d   : > { %1610 = vmatmul.msk.bf16.gmra.mxu1 %vm659_vm2, %v1790_v20  ;;  %1701 = vmatmul.msk.bf16.gmra.mxu0 %vm659_vm2, %v1800_v21 }
 0x20e   : > { %1671 = vmatmul.msk.bf16.gmra.mxu2 %vm659_vm2, %v1797_v22 }
 0x213   : > { %1641 = vmatmul.msk.bf16.gmra.mxu3 %vm659_vm2, %v1794_v23 }
 0x21d   : > { %1702 = vmatmul.msk.bf16.vlgmr.msrb.gmra.mxu1 %vm659_vm2, %v1801_v24 }
 0x21e   : > { %1672 = vmatmul.msk.bf16.gmra.mxu2 %vm659_vm2, %v1798_v25 }
 0x223   : > { %1703 = vmatmul.msk.bf16.vlgmr.msrb.gmra.mxu3 %vm659_vm2, %v1802_v26 }
 0x25a   : > { %v685_v27 = vpop.f32.mrf.mxu1 }
 0x25b   : > { %v710_v42 = vsel %vm706_vm7, %v685_v27, 0.0 }
 0x262   : > { %v687_v28 = vpop.f32.mrf.mxu1 }
 0x263   : > { %v711_v46 = vsel %vm706_vm7, %v687_v28, 0.0 }
 0x266   : > { %v806_v29 = vpop.f32.mrf.mxu3 }
 0x267   : > { %v831_v43 = vsel %vm2712_vm8, %v806_v29, 0.0 }
 0x268   : > { %v839_v49 = vadd.f32 %v831_v43, %v710_v42 }
 0x26a   : > { %v690_v30 = vpop.f32.mrf.mxu1 }
 0x26b   : > { %v712_v1 = vsel %vm706_vm7, %v690_v30, 0.0 }
 0x26e   : > { %v808_v31 = vpop.f32.mrf.mxu3 }
 0x26f   : > { %v832_v44 = vsel %vm2712_vm8, %v808_v31, 0.0 }
 0x270   : > { %v927_v33 = vpop.f32.mrf.mxu2  ;;  %v840_v50 = vadd.f32 %v832_v44, %v711_v46 }
 0x271   : > { %v952_v47 = vsel %vm2716_vm9, %v927_v33, 0.0 }
 0x272   : > { %v692_v34 = vpop.f32.mrf.mxu1  ;;  %v960_v53 = vadd.f32 %v952_v47, %v839_v49 }
 0x273   : > { %v713_v5 = vsel %vm706_vm7, %v692_v34, 0.0 }
 0x276   : > { %v811_v36 = vpop.f32.mrf.mxu3 }
 0x277   : > { %v833_v2 = vsel %vm2712_vm8, %v811_v36, 0.0 }
 0x278   : > { %v929_v37 = vpop.f32.mrf.mxu2  ;;  %v841_v10 = vadd.f32 %v833_v2, %v712_v1 }
 0x279   : > { %v953_v48 = vsel %vm2716_vm9, %v929_v37, 0.0 }
 0x27a   : > { %v695_v39 = vpop.f32.mrf.mxu1  ;;  %v1048_v40 = vpop.f32.mrf.mxu0  ;;  %v961_v54 = vadd.f32 %v953_v48, %v840_v50 }
 0x27b   : > { %v1073_v51 = vsel %vm1068_vm10, %v1048_v40, 0.0  ;;  %v714_v25 = vsel %vm706_vm7, %v695_v39, 0.0 }
 0x27c   : > { %v1081_v58 = vadd.f32 %v1073_v51, %v960_v53 }
 0x27e   : > { %v813_v45 = vpop.f32.mrf.mxu3 }
 0x27f   : > { %v834_v3 = vsel %vm2712_vm8, %v813_v45, 0.0 }
 0x280   : > { %v842_v11 = vadd.f32 %v834_v3, %v713_v5 }
 0x281   : > { %v932_v52 = vpop.f32.mrf.mxu2 }
 0x282   : > { %v697_v55 = vpop.f32.mrf.mxu1  ;;  %v1050_v56 = vpop.f32.mrf.mxu0  ;;  %v954_v6 = vsel %vm2716_vm9, %v932_v52, 0.0 }
 0x283   : > { %v1074_v57 = vsel %vm1068_vm10, %v1050_v56, 0.0  ;;  %v962_v14 = vadd.f32 %v954_v6, %v841_v10  ;;  %v715_v29 = vsel %vm706_vm7, %v697_v55, 0.0 }
 0x284   : > { %v1082_v59 = vadd.f32 %v1074_v57, %v961_v54 }
 0x286   : > { %v1822_v60 = vpack.c.bf16 %v1082_v59, %v1081_v58  ;;  %v816_v61 = vpop.f32.mrf.mxu3 }
 0x287   : > { %v835_v26 = vsel %vm2712_vm8, %v816_v61, 0.0 }
 0x288   : > { %1823 = vst [vmem:[#allocation3] sm:$0xff] %v1822_v60   ;;  %v843_v32 = vadd.f32 %v835_v26, %v714_v25 }
 0x289   : > { %v934_v62 = vpop.f32.mrf.mxu2 }
 0x28a   : > { %v700_v63 = vpop.f32.mrf.mxu1  ;;  %v1053_v0 = vpop.f32.mrf.mxu0  ;;  %v955_v7 = vsel %vm2716_vm9, %v934_v62, 0.0 }
 0x28b   : > { %v1075_v12 = vsel %vm1068_vm10, %v1053_v0, 0.0  ;;  %v963_v15 = vadd.f32 %v955_v7, %v842_v11  ;;  %v716_v47 = vsel %vm706_vm7, %v700_v63, 0.0 }
 0x28c   : > { %v1083_v19 = vadd.f32 %v1075_v12, %v962_v14 }
 0x28e   : > { %v818_v4 = vpop.f32.mrf.mxu3 }
 0x28f   : > { %v836_v27 = vsel %vm2712_vm8, %v818_v4, 0.0 }
 0x290   : > { %v844_v33 = vadd.f32 %v836_v27, %v715_v29 }
 0x291   : > { %v937_v13 = vpop.f32.mrf.mxu2 }
 0x292   : > { %v702_v16 = vpop.f32.mrf.mxu1  ;;  %v1055_v17 = vpop.f32.mrf.mxu0  ;;  %v956_v30 = vsel %vm2716_vm9, %v937_v13, 0.0 }
 0x293   : > { %v1076_v18 = vsel %vm1068_vm10, %v1055_v17, 0.0  ;;  %v964_v37 = vadd.f32 %v956_v30, %v843_v32  ;;  %v717_v51 = vsel %vm706_vm7, %v702_v16, 0.0 }
 0x294   : > { %v1084_v20 = vadd.f32 %v1076_v18, %v963_v15 }
 0x296   : > { %v1827_v21 = vpack.c.bf16 %v1084_v20, %v1083_v19  ;;  %v821_v22 = vpop.f32.mrf.mxu3 }
 0x297   : > { %v837_v48 = vsel %vm2712_vm8, %v821_v22, 0.0 }
 0x298   : > { %1859 = vst [vmem:[#allocation3 + $0x18] sm:$0xff] %v1827_v21   ;;  %v845_v54 = vadd.f32 %v837_v48, %v716_v47 }
 0x299   : > { %v939_v23 = vpop.f32.mrf.mxu2 }
 0x29a   : > { %v1058_v24 = vpop.f32.mrf.mxu1  ;;  %v957_v31 = vsel %vm2716_vm9, %v939_v23, 0.0 }
 0x29b   : > { %v1077_v34 = vsel %vm1068_vm10, %v1058_v24, 0.0  ;;  %v965_v39 = vadd.f32 %v957_v31, %v844_v33 }
 0x29c   : > { %v1085_v43 = vadd.f32 %v1077_v34, %v964_v37 }
 0x29e   : > { %v823_v28 = vpop.f32.mrf.mxu3 }
 0x29f   : > { %v838_v49 = vsel %vm2712_vm8, %v823_v28, 0.0 }
 0x2a0   : > { %v846_v55 = vadd.f32 %v838_v49, %v717_v51 }
 0x2a1   : > { %v942_v36 = vpop.f32.mrf.mxu2 }
 0x2a2   : > { %v1060_v40 = vpop.f32.mrf.mxu1  ;;  %v958_v52 = vsel %vm2716_vm9, %v942_v36, 0.0 }
 0x2a3   : > { %v1078_v42 = vsel %vm1068_vm10, %v1060_v40, 0.0  ;;  %v966_v57 = vadd.f32 %v958_v52, %v845_v54 }
 0x2a4   : > { %v1086_v44 = vadd.f32 %v1078_v42, %v965_v39 }
 0x2a6   : > { %v1832_v45 = vpack.c.bf16 %v1086_v44, %v1085_v43  ;;  %v1063_v46 = vpop.f32.mrf.mxu3 }
 0x2a7   : > { %v1079_v56 = vsel %vm1068_vm10, %v1063_v46, 0.0 }
 0x2a8   : > { %1860 = vst [vmem:[#allocation3 + $0x8] sm:$0xff] %v1832_v45   ;;  %v1087_v60 = vadd.f32 %v1079_v56, %v966_v57 }
 0x2a9   : > { %v944_v50 = vpop.f32.mrf.mxu2 }
 0x2aa   : > { %v959_v53 = vsel %vm2716_vm9, %v944_v50, 0.0 }
 0x2ab   : > { %v967_v58 = vadd.f32 %v959_v53, %v846_v55 }
 0x2ae   : > { %v1065_v59 = vpop.f32.mrf.mxu3 }
 0x2af   : > { %v1080_v38 = vsel %vm1068_vm10, %v1065_v59, 0.0 }
 0x2b0   : > { %v1088_v61 = vadd.f32 %v1080_v38, %v967_v58 }
 0x2b2   : > { %v1837_v62 = vpack.c.bf16 %v1088_v61, %v1087_v60 }
 0x2b4   : > { %1861 = vst [vmem:[#allocation3 + $0x10] sm:$0xff] %v1837_v62  }
 0x2b5 PF: > { %s3005_s3 = sld [smem:[#allocation20_spill]] }
 0x2bb   : > { %p1704_p7 = scmp.ne.s32.totalorder %s3005_s3, 1 }
 0x2bc   : > { %s3006_s18 = sld [smem:[#allocation37_spill]] (!%p1704_p7) }
 0x2bd   : > { %1108 = sbr.rel (%p1704_p7) target bundleno = 903 (0x387), region = 118  ;;  %s3008_s0 = sld [smem:[#allocation39_spill]] (!%p1704_p7) }
 0x2c2   : > { %v1818_v41 = vld [vmem:[%s2580_s23 + $0x38] sm:$0xff]  ;;  %1883 = vmatpush.bf16.msra.mxu3 %v2591_v9  ;;  %1281 = vmatpush.bf16.msra.mxu1 %v2591_v9  ;;  %v1817_v35 = vld [vmem:[%s2580_s23 + $0x30] sm:$0xff]  ;;  %s3007_s5 = smov %s3006_s18  ;;  %v1804_v63 = vld [vmem:[%s3006_s18 + $0x8] sm:$0xff]  ;;  %vm1262_vm11 = vcmask 261120   ;;  %v2297_v2 = vmov 0  }
 0x2c3   : > { %1213 = vmatpush.bf16.msra.mxu0 %v1818_v41  ;;  %1875 = vmatpush.bf16.msra.mxu2 %v1818_v41  ;;  %v1803_v0 = vld [vmem:[%s3007_s5] sm:$0xff]  ;;  %v1816_v9 = vld [vmem:[%s2580_s23 + $0x28] sm:$0xff]  ;;  %v1306_v1 = vld [vmem:[%s3008_s0 + $0x10] sm:$0xff] }
 0x2c4   : > { %2051 = vset.pattern.permute.xlu1 %v2297_v2  ;;  %2050 = vset.pattern.permute.xlu0 %v2297_v2  ;;  %v1815_v3 = vld [vmem:[%s2580_s23 + $0x20] sm:$0xff]  ;;  %v1814_v4 = vld [vmem:[%s2580_s23 + $0x18] sm:$0xff]  ;;  %v1305_v6 = vld [vmem:[%s3008_s0 + $0x8] sm:$0xff] }
 0x2c5   : > { %1324 = vperm.xlu1 %2051, %v1306_v1   ;;  %2052 = vset.pattern.permute.xlu2 %v2297_v2  ;;  %v1307_v5 = vld [vmem:[%s3008_s0 + $0x18] sm:$0xff]  ;;  %v1813_v7 = vld [vmem:[%s2580_s23 + $0x10] sm:$0xff]  ;;  %v1308_v10 = vld [vmem:[%s3008_s0 + $0x20] sm:$0xff] }
 0x2c6   : > { %1884 = vmatpush.bf16.msra.mxu3 %v2589_v8  ;;  %1282 = vmatpush.bf16.msra.mxu1 %v2589_v8  ;;  %v1304_v8 = vld [vmem:[%s3008_s0] sm:$0xff]  ;;  %v1805_v11 = vld [vmem:[%s3007_s5 + $0x10] sm:$0xff]  ;;  %v1812_v12 = vld [vmem:[%s2580_s23 + $0x8] sm:$0xff] }
 0x2c7   : > { %1214 = vmatpush.bf16.msra.mxu0 %v1817_v35  ;;  %1876 = vmatpush.bf16.msra.mxu2 %v1817_v35  ;;  %v1311_v13 = vld [vmem:[%s3008_s0 + $0x38] sm:$0xff]  ;;  %v1310_v14 = vld [vmem:[%s3008_s0 + $0x30] sm:$0xff]  ;;  %v1309_v15 = vld [vmem:[%s3008_s0 + $0x28] sm:$0xff] }
 0x2c8   : > { %1314 = vperm.xlu0 %2050, %v1304_v8   ;;  %1334 = vperm.xlu2 %2052, %v1308_v10   ;;  %v1811_v16 = vld [vmem:[%s2580_s23] sm:$0xff]  ;;  %v1809_v18 = vld [vmem:[#allocation3 + $0x8] sm:$0xff]  ;;  %v1806_v19 = vld [vmem:[%s3007_s5 + $0x18] sm:$0xff] }
 0x2c9   : > { %1770 = vmatmul.msk.bf16.vlgmr.msra.gmra.mxu3 %vm1262_vm11, %v1804_v63  ;;  %1769 = vmatmul.msk.bf16.vlgmr.msra.gmra.mxu1 %vm1262_vm11, %v1803_v0  ;;  %v1807_v17 = vld [vmem:[#allocation3] sm:$0xff]  ;;  %v1808_v20 = vld [vmem:[#allocation3 + $0x18] sm:$0xff]  ;;  %v1810_v21 = vld [vmem:[#allocation3 + $0x10] sm:$0xff] }
 0x2cb   : > { %1215 = vmatpush.bf16.msra.mxu0 %v1816_v9  ;;  %1877 = vmatpush.bf16.msra.mxu2 %v1816_v9 }
 0x2cd   : > { %1329 = vperm.xlu1 %2051, %v1307_v5  }
 0x2cf   : > { %1216 = vmatpush.bf16.msra.mxu0 %v1815_v3  ;;  %1878 = vmatpush.bf16.msra.mxu2 %v1815_v3 }
 0x2d0   : > { %1319 = vperm.xlu0 %2050, %v1305_v6   ;;  %1339 = vperm.xlu2 %2052, %v1309_v15  }
 0x2d3   : > { %1217 = vmatpush.bf16.msra.mxu0 %v1814_v4  ;;  %1879 = vmatpush.bf16.msra.mxu2 %v1814_v4 }
 0x2d5   : > { %1349 = vperm.xlu1 %2051, %v1311_v13  }
 0x2d7   : > { %1218 = vmatpush.bf16.msra.mxu0 %v1813_v7  ;;  %1880 = vmatpush.bf16.msra.mxu2 %v1813_v7 }
 0x2d8   : > { %1344 = vperm.xlu0 %2050, %v1310_v14  }
 0x2d9   : > { %1771 = vmatmul.msk.bf16.gmra.mxu3 %vm1262_vm11, %v1805_v11 }
 0x2db   : > { %1219 = vmatpush.bf16.msra.mxu0 %v1812_v12  ;;  %1881 = vmatpush.bf16.msra.mxu2 %v1812_v12 }
 0x2df   : > { %1220 = vmatpush.bf16.msra.mxu0 %v1811_v16  ;;  %1882 = vmatpush.bf16.msra.mxu2 %v1811_v16 }
 0x2e2   : > { %1221 = vmatmul.bf16.vlgmr.msra.gmra.mxu0 %v1807_v17  ;;  %1231 = vmatmul.bf16.vlgmr.msra.gmra.mxu2 %v1809_v18 }
 0x2e9   : > { %1772 = vmatmul.msk.bf16.gmra.mxu3 %vm1262_vm11, %v1806_v19 }
 0x2f2   : > { %1226 = vmatmul.bf16.gmra.mxu0 %v1808_v20  ;;  %1236 = vmatmul.bf16.gmra.mxu2 %v1810_v21 }
 0x322   : > { %v1335_v28 = vpop.permute.xlu2 %1334 }
 0x32a   : > { %v1340_v46 = vpop.permute.xlu2 %1339 }
 0x337   : > { %v1325_v42 = vpop.permute.xlu1 %1324 }
 0x33a   : > { %v1315_v25 = vpop.permute.xlu0 %1314 }
 0x33f   : > { %v1330_v57 = vpop.permute.xlu1 %1329 }
 0x342   : > { %v1320_v37 = vpop.permute.xlu0 %1319 }
 0x346   : > { %v1284_v24 = vpop.f32.mrf.mxu1 }
 0x347   : > { %v1350_v3 = vpop.permute.xlu1 %1349 }
 0x34a   : > { %v1345_v41 = vpop.permute.xlu0 %1344 }
 0x34c   : > { %v1289_v22 = vpop.f32.mrf.mxu3 }
 0x34e   : > { %v1286_v31 = vpop.f32.mrf.mxu1 }
 0x354   : > { %v1291_v23 = vpop.f32.mrf.mxu3 }
 0x35c   : > { %v1294_v26 = vpop.f32.mrf.mxu3 }
 0x35f   : > { %v1222_v27 = vpop.f32.mrf.mxu0 }
 0x360   : > { %v1285_v29 = vadd.f32 %v1284_v24, %v1222_v27 }
 0x362   : > { %v1352_v33 = vadd.f32 %v1315_v25, %v1285_v29 }
 0x364   : > { %v1296_v36 = vpop.f32.mrf.mxu3  ;;  %v1360_v43 = vmax.f32 %v1352_v33, 0.0 }
 0x365   : > { %v1232_v30 = vpop.f32.mrf.mxu2 }
 0x366   : > { %v1295_v39 = vadd.f32 %v1294_v26, %v1232_v30 }
 0x367   : > { %v1224_v32 = vpop.f32.mrf.mxu0 }
 0x368   : > { %v1287_v34 = vadd.f32 %v1286_v31, %v1224_v32  ;;  %v1356_v47 = vadd.f32 %v1335_v28, %v1295_v39 }
 0x36a   : > { %v1353_v40 = vadd.f32 %v1320_v37, %v1287_v34  ;;  %v1364_v52 = vmax.f32 %v1356_v47, 0.0 }
 0x36c   : > { %v1361_v44 = vmax.f32 %v1353_v40, 0.0  ;;  %v1299_v54 = vpop.f32.mrf.mxu3 }
 0x36d   : > { %v1234_v45 = vpop.f32.mrf.mxu2 }
 0x36e   : > { %v1842_v48 = vpack.c.bf16 %v1361_v44, %v1360_v43  ;;  %v1297_v49 = vadd.f32 %v1296_v36, %v1234_v45 }
 0x36f   : > { %v1227_v50 = vpop.f32.mrf.mxu0 }
 0x370   : > { %1843 = vst [vmem:[%s2593_s7] sm:$0xff] %v1842_v48   ;;  %v1357_v51 = vadd.f32 %v1340_v46, %v1297_v49  ;;  %v1290_v56 = vadd.f32 %v1289_v22, %v1227_v50 }
 0x372   : > { %v1365_v53 = vmax.f32 %v1357_v51, 0.0  ;;  %v1354_v38 = vadd.f32 %v1325_v42, %v1290_v56 }
 0x374   : > { %v1852_v55 = vpack.c.bf16 %v1365_v53, %v1364_v52  ;;  %v1362_v35 = vmax.f32 %v1354_v38, 0.0  ;;  %v1301_v0 = vpop.f32.mrf.mxu3 }
 0x375   : > { %v1237_v58 = vpop.f32.mrf.mxu2 }
 0x376   : > { %1863 = vst [vmem:[%s2593_s7 + $0x10] sm:$0xff] %v1852_v55   ;;  %v1300_v61 = vadd.f32 %v1299_v54, %v1237_v58 }
 0x377   : > { %v1229_v59 = vpop.f32.mrf.mxu0 }
 0x378   : > { %v1292_v60 = vadd.f32 %v1291_v23, %v1229_v59  ;;  %v1358_v1 = vadd.f32 %v1345_v41, %v1300_v61 }
 0x37a   : > { %v1355_v62 = vadd.f32 %v1330_v57, %v1292_v60  ;;  %v1366_v5 = vmax.f32 %v1358_v1, 0.0 }
 0x37c   : > { %v1363_v63 = vmax.f32 %v1355_v62, 0.0 }
 0x37d   : > { %v1239_v9 = vpop.f32.mrf.mxu2 }
 0x37e   : > { %v1847_v8 = vpack.c.bf16 %v1363_v63, %v1362_v35  ;;  %v1302_v2 = vadd.f32 %v1301_v0, %v1239_v9 }
 0x380   : > { %1862 = vst [vmem:[%s2593_s7 + $0x8] sm:$0xff] %v1847_v8   ;;  %v1359_v4 = vadd.f32 %v1350_v3, %v1302_v2 }
 0x382   : > { %v1367_v6 = vmax.f32 %v1359_v4, 0.0 }
 0x384   : > { %v1857_v7 = vpack.c.bf16 %v1367_v6, %v1366_v5 }
 0x386   : > { %1864 = vst [vmem:[%s2593_s7 + $0x18] sm:$0xff] %v1857_v7  }
 0x387 PF: > { %s3009_s23 = sld [smem:[#allocation20_spill]]  ;;  %s1399_s21 = sshll.u32 %s2593_s7, 4  ;;  %s1400_s21 = int_to_ptr.vmem [resolvable:$true] %s1399_s21 }
 0x388   : > { %s3010_s13 = sld [smem:[#allocation19_spill]]  ;;  %s1385_s6 = scalar_lea.sflag [#allocation7], %s467_s2 }
 0x389   : > { %s3011_s15 = sld [smem:[#allocation21_spill]] }
 0x38a   : > { %s3012_s18 = sld [smem:[#allocation40_spill]] }
 0x38e   : > { %s1392_s16 = smul.u32 %s3010_s13, %s3009_s23 }
 0x38f   : > { %s1774_s19 = sshll.u32 %s3011_s15, 4 }
 0x390   : > { %s1396_s11 = sadd.s32 %s1774_s19, %s1392_s16  ;;  %s3013_s8 = smov %s3012_s18 }
 0x391   : > { %s1775_s3 = sshll.u32 %s1396_s11, 2  ;;  %s2129_s13 = scalar_lea.hbm %s3013_s8, 128 }
 0x392   : > { %s1398_s30 = scalar_lea.hbm %s3012_s18, %s1775_s3 }
 0x393   : > { %s1401_s17 = sshll.u32 %s1398_s30, 4  ;;  %s1402_s17 = int_to_ptr.hbm [resolvable:$true] %s1401_s17 }
 0x394   : > { %s2123_s29 = sshra.s32 %s1402_s17, 4  ;;  %s2124_s29 = int_to_ptr.hbm [resolvable:$true] %s2123_s29 }
 0x395   : > { %s2125_s27 = scalar_lea.hbm %s2124_s29, 32  ;;  %p2130_p0 = scmp.lt.s32.totalorder %s2124_s29, %s3013_s8 }
 0x396   : > { %p2126_p9 = scmp.ne.s32.totalorder %s2124_s29, %s2125_s27  ;;  %p2131_p4 = scmp.lt.s32.totalorder %s2129_s13, %s2125_s27 }
 0x398   : > { %p2127_p2 = pnand %p2126_p9, %p2534_p11  ;;  %p2132_p8 = por %p2131_p4, %p2130_p0 }
 0x39a   : > { %p2128_p10 = pneg %p2127_p2 }
 0x39c   : > { %p2133_p1 = pnand %p2132_p8, %p2128_p10 }
 0x39e   : > { %2136 = shalt.err (!%p2133_p1)
}
 0x39f   : > { %s2298_s2 = smov 64   ;;  %s2299_s19 = smov 128  }
 0x3a0   : > { %s2300_s11 = smov 4  }
 0x3a1   : > { %1889 = dma.vmem_to_hbm [thread:$0]  (%p2534_p11), %s1400_s21, 512, %s1402_s17, %s1385_s6, %s2298_s2, %s2299_s19, %s2300_s11  }
 0x3a2 PF: > { %s3014_s3 = sld [smem:[#allocation14_spill]]  ;;  %p1895_p12 = scmp.ge.s32.totalorder %s2291_s22, 2 }
 0x3a4   : > { %p1892_p3 = pnand %p1895_p12, %p2542_p13 }
 0x3a6   : > { %p1893_p5 = pneg %p1892_p3 }
 0x3a8   : > { %s1416_s26 = sand.u32 1, %s3014_s3  }
 0x3a9   : > { %s1417_s18 = scalar_lea.sflag [#allocation7], %s1416_s26 }
 0x3aa   : > { %2218 = dma.done.wait (%p1893_p5), %s1417_s18, 512  }
 0x3ab   : > { %2220 = vsyncadd (%p1893_p5), %s1417_s18, 4294966784  ;;  %s27_s22 = sadd.s32 1, %s2291_s22   ;;  %s3017_s14 = sld [smem:[#allocation15_spill]] }
 0x3ac   : > { %p2866_p6 = scmp.ge.s32.totalorder %s27_s22, 10   ;;  %s3018_s29 = sld [smem:[#allocation31_spill]] }
 0x3ad   : > { %s3019_s21 = sld [smem:[#allocation30_spill]]  ;;  %s3029_s27 = smov %s2227_s28 }
 0x3ae   : > { %s3020_s17 = sld [smem:[#allocation16_spill]]  ;;  %s3033_s30 = smov %s2239_s9 }
 0x3af   : > { %s3021_s13 = sld [smem:[#allocation28_spill]]  ;;  %s3034_s9 = smov %s2243_s10 }
 0x3b0   : > { %s3022_s6 = sld [smem:[#allocation18_spill]]  ;;  %s3036_s11 = smov %s2251_s12 }
 0x3b1   : > { %s3023_s15 = sld [smem:[#allocation29_spill]]  ;;  %s3031_s28 = smov %s3017_s14 }
 0x3b2   : > { %s3024_s16 = sld [smem:[#allocation22_spill]] }
 0x3b3   : > { %s3025_s23 = sld [smem:[#allocation23_spill]]  ;;  %s3035_s10 = smov %s3019_s21 }
 0x3b4   : > { %s3026_s18 = sld [smem:[#allocation24_spill]]  ;;  %s3037_s12 = smov %s3020_s17 }
 0x3b5   : > { %s3027_s19 = sld [smem:[#allocation25_spill]] }
 0x3b6   : > { %s3028_s20 = sld [smem:[#allocation26_spill]]  ;;  %s3038_s14 = smov %s3022_s6 }
 0x3b7   : > { %s3030_s7 = sld [smem:[#allocation27_spill]] }
 0x3b9   : > { %s3039_s17 = smov %s3025_s23  ;;  %26 = sbr.rel (!%p2866_p6) target bundleno = 23 (0x17), region = 185 }
 0x3bd   : > { %s3040_s21 = smov %s3030_s7 }
 0x3be   :  { %1423 = vsyncpa [#allocation6], 1 }
 0x3bf   :  { %1425 = vsyncpa [#allocation6 + $0x1], 1 }
 0x3c0   :  { %1426 = vsyncpa [#allocation9], 1 }
 0x3c1   :  { %1428 = vsyncpa [#allocation9 + $0x1], 1 }
 0x3c2   :  { %1429 = vsyncpa [#allocation7], 1 }
 0x3c3   :  { %1431 = vsyncpa [#allocation7 + $0x1], 1 }

</bundles_post_ra>
